<compile_context>
chip_gen: v6e
topology: v6e:2x2x1
jax: 0.10.0
libtpu: 0.0.40
codegen_flags: <defaults>
</compile_context>

<pallas_src>
import functools

import jax
import jax.numpy as jnp
import numpy as np
from jax.experimental import pallas as pl
from jax.experimental.pallas import tpu as pltpu

C1, C2, CIN, COUT = 16, 32, 3, 3


# -----------------------------------------------------------------------------
# One-time (hoisted) parameter preprocessing: expand conv / pool / deconv
# operators into dense matrices acting on lane-dense (rows, width*channels)
# activation tiles.
# -----------------------------------------------------------------------------
def _band_matrix(w_hwio, width):
    """(3,3,Cin,Cout) -> (3*width*Cin, width*Cout) stacked band matrix.

    Width zero-padding is folded in (edge-clipped bands).  The kernel multiplies
    the lane-concatenation of the three row-shifted input slices (ky = 0,1,2) by
    this matrix: one MXU matmul per conv layer.
    """
    cin, cout = w_hwio.shape[2], w_hwio.shape[3]
    blocks = []
    for ky in range(3):
        a = jnp.zeros((width * cin, width * cout), jnp.float32)
        for kx in range(3):
            # p[wi, wo] = 1 iff wi == wo + kx - 1  (input col feeding output col)
            p = jnp.eye(width, width, k=1 - kx, dtype=jnp.float32)
            a = a + jnp.kron(p, w_hwio[ky, kx].astype(jnp.float32))
        blocks.append(a)
    return jnp.concatenate(blocks, axis=0)


def _col_pool_matrices(width, channels):
    """0/1 matrices (width*C, (width//2)*C) selecting even / odd w columns."""
    w = jnp.arange(width)[:, None]
    p = jnp.arange(width // 2)[None, :]
    pe = (w == 2 * p).astype(jnp.float32)
    po = (w == 2 * p + 1).astype(jnp.float32)
    eye_c = jnp.eye(channels, dtype=jnp.float32)
    return jnp.kron(pe, eye_c), jnp.kron(po, eye_c)


def _row_select_matrix(bt, h_in, pad):
    """Even-row compaction over the "tall" (bt images stacked) layout.

    Source: M = max(t[:-1], t[1:]) computed in-kernel, with t the conv output of
    bt images each occupying (h_in + 2) consecutive rows (valid rows 0..h_in-1
    inside each image block; the 2 cross-image rows are garbage and are never
    selected).  Row r of the result is pooled row j of image b; `pad` extra
    all-zero rows per image emit the next conv's height zero-padding.
    Shape: (bt*(h_in//2 + 2*pad), bt*(h_in+2) - 3).
    """
    h_out = h_in // 2
    rows = bt * (h_out + 2 * pad)
    cols = bt * (h_in + 2) - 3
    m = np.zeros((rows, cols), np.float32)
    for b in range(bt):
        for j in range(h_out):
            m[b * (h_out + 2 * pad) + pad + j, b * (h_in + 2) + 2 * j] = 1.0
    return jnp.asarray(m)


def _deconv_matrix(w, win):
    """ConvTranspose2d(k=2,s=2) as one matrix (win*Cin, 2*(2*win)*Cout).

    Row layout (x, c); column layout (ky, 2*x+kx, d): one matmul of an input row
    produces both of its output rows side by side ("sub-pixel planes")."""
    cin, cout = w.shape[2], w.shape[3]
    d6 = jnp.einsum("jJ,uvcd->jcuJvd",
                    jnp.eye(win, dtype=jnp.float32), w.astype(jnp.float32))
    return d6.reshape(win * cin, 4 * win * cout)


def prepare_operators(params, H, W, bt):
    """Build all resident operator matrices ONCE (hoisted out of the forward)."""
    bf16 = jnp.bfloat16
    H2, W2, W4 = H // 2, W // 2, W // 4
    w4p = jnp.pad(params["w4"], ((0, 0), (0, 0), (0, 0), (0, 1)))  # 3 -> 4 out ch
    se1, so1 = _col_pool_matrices(W, C1)
    se2, so2 = _col_pool_matrices(W2, C2)
    ops = {
        "a1": _band_matrix(params["w1"], W),                 # (3*W*3,    W*16)
        "a2": _band_matrix(params["w2"], W2),                # (3*W2*16,  W2*32)
        "se1": se1, "so1": so1,                              # (W*16,     W2*16)
        "se2": se2, "so2": so2,                              # (W2*32,    W4*32)
        "e1": _row_select_matrix(bt, H, pad=1),              # (bt*(H2+2), bt*(H+2)-3)
        "e2": _row_select_matrix(bt, H2, pad=0),             # (bt*H4,     bt*(H2+2)-3)
        "d3": _deconv_matrix(params["w3"], W4),              # (W4*32,    4*W4*16)
        "d4": jnp.kron(jnp.eye(2, dtype=jnp.float32),
                       _deconv_matrix(w4p, W2)),             # (4*W4*16,  4*W*4)
    }
    ops = {k: v.astype(bf16) for k, v in ops.items()}        # bf16 MXU operands
    ops["b1"] = jnp.tile(params["b1"], W)[None].astype(jnp.float32)
    ops["b2"] = jnp.tile(params["b2"], W2)[None].astype(jnp.float32)
    ops["b3"] = jnp.tile(params["b3"], 4 * W4)[None].astype(jnp.float32)
    ops["b4"] = jnp.tile(jnp.pad(params["b4"], (0, 1)), 4 * W)[None].astype(jnp.float32)
    return ops


# -----------------------------------------------------------------------------
# Fused kernel: one grid step = full forward pass for `bt` images.
# -----------------------------------------------------------------------------
_OP_ORDER = ("a1", "b1", "se1", "so1", "e1",
             "a2", "b2", "se2", "so2", "e2",
             "d3", "b3", "d4", "b4")


def _fused_autoencoder_kernel(
        xp_ref, a1_ref, b1_ref, se1_ref, so1_ref, e1_ref,
        a2_ref, b2_ref, se2_ref, so2_ref, e2_ref,
        d3_ref, b3_ref, d4_ref, b4_ref, out_ref, *, bt, H):
    f32, bf16 = jnp.float32, jnp.bfloat16
    H2 = H // 2
    R1 = bt * (H + 2) - 2      # "tall" conv1 output rows (incl. cross-image junk)
    R2 = bt * (H2 + 2) - 2     # "tall" conv2 output rows

    def mm(a, b):              # bf16 x bf16 -> f32 accumulation on the MXU
        return jnp.dot(a, b, preferred_element_type=f32)

    xp = xp_ref[0]                                                  # (bt*(H+2), W*3)

    # ---- encoder 1: Conv2d(3->16,3x3,pad=1)+ReLU : ONE matmul, K = 3*W*3 ------
    xc1 = jnp.concatenate([xp[0:R1], xp[1:R1 + 1], xp[2:R1 + 2]], axis=-1)
    y1 = jnp.maximum(mm(xc1, a1_ref[...]) + b1_ref[...], 0.0).astype(bf16)

    # ---- MaxPool2d(2,2) #1 (+ conv2 height zero-pad) --------------------------
    t1 = jnp.maximum(mm(y1, se1_ref[...]), mm(y1, so1_ref[...]))    # width pairs
    m1 = jnp.maximum(t1[:-1], t1[1:]).astype(bf16)                  # height pairs (VPU)
    z1 = mm(e1_ref[...], m1).astype(bf16)                           # compact + pad

    # ---- encoder 2: Conv2d(16->32,3x3,pad=1)+ReLU : ONE matmul, K = 3*W2*16 ---
    xc2 = jnp.concatenate([z1[0:R2], z1[1:R2 + 1], z1[2:R2 + 2]], axis=-1)
    y2 = jnp.maximum(mm(xc2, a2_ref[...]) + b2_ref[...], 0.0).astype(bf16)

    # ---- MaxPool2d(2,2) #2 -----------------------------------------------------
    t2 = jnp.maximum(mm(y2, se2_ref[...]), mm(y2, so2_ref[...]))
    m2 = jnp.maximum(t2[:-1], t2[1:]).astype(bf16)
    x3 = mm(e2_ref[...], m2).astype(bf16)                           # (bt*H4, W4*32)

    # ---- decoder: ConvTranspose2d(32->16,k2,s2)+ReLU : one matmul -------------
    y3 = jnp.maximum(mm(x3, d3_ref[...]) + b3_ref[...], 0.0).astype(bf16)

    # ---- decoder: ConvTranspose2d(16->3(+1 pad),k2,s2)+Sigmoid : one matmul ---
    y4 = mm(y3, d4_ref[...]) + b4_ref[...]                          # (bt*H4, 4*W*4)
    out_ref[0] = (0.5 * jnp.tanh(0.5 * y4) + 0.5).astype(out_ref.dtype)


# -----------------------------------------------------------------------------
# Forward wrapper (NCHW in / NCHW out, like the PyTorch module)
# -----------------------------------------------------------------------------
def pick_bt(N, H):
    """bt*H ~ 256 (MXU row fill on v6e/v7x) while keeping >=2 grid steps (v7x)."""
    bt = max(1, min(N, 256 // (H + 2)))
    if N >= 2:
        bt = min(bt, max(1, N // 2))
    while N % bt:
        bt -= 1
    return bt


def model_forward(x_nchw, ops, *, bt):
    N, cin, H, W = x_nchw.shape
    assert cin == CIN and H % 4 == 0 and W % 4 == 0 and N % bt == 0
    H4 = H // 4
    nsteps = N // bt
    rows_in, rows_out, lanes_out = bt * (H + 2), bt * H4, 4 * W * 4

    # layout glue: NCHW -> NHWC, height pad only (width pad folded into bands),
    # stack the bt images of a block into one tall (rows, W*Cin) bf16 tile.
    x = jnp.transpose(x_nchw, (0, 2, 3, 1))
    xp = jnp.pad(x, ((0, 0), (1, 1), (0, 0), (0, 0)))
    xp = xp.reshape(nsteps, rows_in, W * CIN).astype(jnp.bfloat16)

    def rep(a):  # resident weight operand: full-array block, constant index map
        nd = a.ndim
        return pl.BlockSpec(a.shape, lambda n, _nd=nd: (0,) * _nd)

    out = pl.pallas_call(
        functools.partial(_fused_autoencoder_kernel, bt=bt, H=H),
        out_shape=jax.ShapeDtypeStruct((nsteps, rows_out, lanes_out), jnp.float32),
        grid=(nsteps,),
        in_specs=[pl.BlockSpec((1, rows_in, W * CIN), lambda n: (n, 0, 0))]
                 + [rep(ops[k]) for k in _OP_ORDER],
        out_specs=pl.BlockSpec((1, rows_out, lanes_out), lambda n: (n, 0, 0)),
        compiler_params=pltpu.CompilerParams(
            dimension_semantics=("parallel",),      # shard steps over v7x's 2 TCs
            vmem_limit_bytes=32 * 1024 * 1024),     # explicit (covers v5e default)
    )(xp, *(ops[k] for k in _OP_ORDER))

    # undo the sub-pixel plane layout, drop the padded 4th channel, NHWC -> NCHW.
    out = out.reshape(N, H4, 2, 2, W, 4)[..., :COUT].reshape(N, H, W, COUT)
    return jnp.transpose(out, (0, 3, 1, 2))


# -----------------------------------------------------------------------------
# Plain-JAX reference (numeric self-check)
# -----------------------------------------------------------------------------
def reference_forward(x_nchw, p):
    x = jnp.transpose(x_nchw, (0, 2, 3, 1))

    def conv_block(y, w, b):
        y = jax.lax.conv_general_dilated(
            y, w, window_strides=(1, 1), padding="SAME",
            dimension_numbers=("NHWC", "HWIO", "NHWC")) + b
        y = jnp.maximum(y, 0.0)
        return jax.lax.reduce_window(y, -jnp.inf, jax.lax.max,
                                     (1, 2, 2, 1), (1, 2, 2, 1), "VALID")

    def deconv_block(y, w, b, act):
        N, H, W, _ = y.shape
        cout = w.shape[-1]
        o = jnp.einsum("nhwc,uvcd->nhuwvd", y, w).reshape(N, 2 * H, 2 * W, cout) + b
        return jnp.maximum(o, 0.0) if act == "relu" else jax.nn.sigmoid(o)

    y = conv_block(x, p["w1"], p["b1"])
    y = conv_block(y, p["w2"], p["b2"])
    y = deconv_block(y, p["w3"], p["b3"], "relu")
    y = deconv_block(y, p["w4"], p["b4"], "sigmoid")
    return jnp.transpose(y, (0, 3, 1, 2))


if __name__ == "__main__":
    key = jax.random.PRNGKey(0)
    ks = jax.random.split(key, 9)
    params = {
        # encoder conv weights in HWIO
        "w1": jax.random.normal(ks[0], (3, 3, 3, 16), jnp.float32) * 0.1,
        "b1": jax.random.normal(ks[1], (16,), jnp.float32) * 0.05,
        "w2": jax.random.normal(ks[2], (3, 3, 16, 32), jnp.float32) * 0.1,
        "b2": jax.random.normal(ks[3], (32,), jnp.float32) * 0.05,
        # decoder ConvTranspose2d weights as (kh, kw, Cin, Cout)
        "w3": jax.random.normal(ks[4], (2, 2, 32, 16), jnp.float32) * 0.1,
        "b3": jax.random.normal(ks[5], (16,), jnp.float32) * 0.05,
        "w4": jax.random.normal(ks[6], (2, 2, 16, 3), jnp.float32) * 0.1,
        "b4": jax.random.normal(ks[7], (3,), jnp.float32) * 0.05,
    }
    x = jax.random.normal(ks[8], (2, 3, 16, 16), jnp.float32)   # NCHW, like PyTorch

    N, _, H, W = x.shape
    bt = pick_bt(N, H)
    ops = prepare_operators(params, H, W, bt)                   # hoisted, built once

    fwd = jax.jit(functools.partial(model_forward, bt=bt))
    out = jax.block_until_ready(fwd(x, ops))
    assert out.shape == (2, 3, 16, 16), out.shape

    ref = reference_forward(x, params)
    # bf16 matmul operands (input, weights, intermediate activations) give ~1e-3
    # absolute deviation at the sigmoid output; tolerance sized with headroom.
    if not np.allclose(np.asarray(out), np.asarray(ref), rtol=2e-2, atol=2e-2):
        raise AssertionError("Pallas output does not match reference")

    print("KERNEL_OK")
</pallas_src>

<mosaic_0001>
module attributes {stable_mosaic.version = 11 : i64} {
  func.func @_fused_autoencoder_kernel(%arg0: i32, %arg1: memref<1x18x48xbf16, #tpu.memory_space<vmem>>, %arg2: memref<144x256xbf16, #tpu.memory_space<vmem>>, %arg3: memref<1x256xf32, #tpu.memory_space<vmem>>, %arg4: memref<256x128xbf16, #tpu.memory_space<vmem>>, %arg5: memref<256x128xbf16, #tpu.memory_space<vmem>>, %arg6: memref<10x15xbf16, #tpu.memory_space<vmem>>, %arg7: memref<384x256xbf16, #tpu.memory_space<vmem>>, %arg8: memref<1x256xf32, #tpu.memory_space<vmem>>, %arg9: memref<256x128xbf16, #tpu.memory_space<vmem>>, %arg10: memref<256x128xbf16, #tpu.memory_space<vmem>>, %arg11: memref<4x7xbf16, #tpu.memory_space<vmem>>, %arg12: memref<128x256xbf16, #tpu.memory_space<vmem>>, %arg13: memref<1x256xf32, #tpu.memory_space<vmem>>, %arg14: memref<256x256xbf16, #tpu.memory_space<vmem>>, %arg15: memref<1x256xf32, #tpu.memory_space<vmem>>, %arg16: memref<1x4x256xf32, #tpu.memory_space<vmem>>) attributes {dimension_semantics = [#tpu.dimension_semantics<parallel>], iteration_bounds = array<i64: 2>, scalar_prefetch = 0 : i64, scratch_operands = 0 : i64, tpu.core_type = #tpu.core_type<tc>, window_params = [{transform_indices = @transform_0, window_bounds = array<i64: 1, 18, 48>}, {pipeline_mode = #tpu.pipeline_mode<synchronous>, transform_indices = @transform_1, window_bounds = array<i64: 144, 256>}, {pipeline_mode = #tpu.pipeline_mode<synchronous>, transform_indices = @transform_2, window_bounds = array<i64: 1, 256>}, {pipeline_mode = #tpu.pipeline_mode<synchronous>, transform_indices = @transform_3, window_bounds = array<i64: 256, 128>}, {pipeline_mode = #tpu.pipeline_mode<synchronous>, transform_indices = @transform_4, window_bounds = array<i64: 256, 128>}, {pipeline_mode = #tpu.pipeline_mode<synchronous>, transform_indices = @transform_5, window_bounds = array<i64: 10, 15>}, {pipeline_mode = #tpu.pipeline_mode<synchronous>, transform_indices = @transform_6, window_bounds = array<i64: 384, 256>}, {pipeline_mode = #tpu.pipeline_mode<synchronous>, transform_indices = @transform_7, window_bounds = array<i64: 1, 256>}, {pipeline_mode = #tpu.pipeline_mode<synchronous>, transform_indices = @transform_8, window_bounds = array<i64: 256, 128>}, {pipeline_mode = #tpu.pipeline_mode<synchronous>, transform_indices = @transform_9, window_bounds = array<i64: 256, 128>}, {pipeline_mode = #tpu.pipeline_mode<synchronous>, transform_indices = @transform_10, window_bounds = array<i64: 4, 7>}, {pipeline_mode = #tpu.pipeline_mode<synchronous>, transform_indices = @transform_11, window_bounds = array<i64: 128, 256>}, {pipeline_mode = #tpu.pipeline_mode<synchronous>, transform_indices = @transform_12, window_bounds = array<i64: 1, 256>}, {pipeline_mode = #tpu.pipeline_mode<synchronous>, transform_indices = @transform_13, window_bounds = array<i64: 256, 256>}, {pipeline_mode = #tpu.pipeline_mode<synchronous>, transform_indices = @transform_14, window_bounds = array<i64: 1, 256>}, {transform_indices = @transform_15, window_bounds = array<i64: 1, 4, 256>}]} {
    %c0 = arith.constant 0 : index
    %c0_0 = arith.constant 0 : index
    %c0_1 = arith.constant 0 : index
    %0 = vector.load %arg1[%c0, %c0_0, %c0_1] : memref<1x18x48xbf16, #tpu.memory_space<vmem>>, vector<1x18x48xbf16>
    %1 = vector.shape_cast %0 : vector<1x18x48xbf16> to vector<18x48xbf16>
    %2 = vector.extract_strided_slice %1 {offsets = [0, 0], sizes = [16, 48], strides = [1, 1]} : vector<18x48xbf16> to vector<16x48xbf16>
    %3 = vector.extract_strided_slice %1 {offsets = [1, 0], sizes = [16, 48], strides = [1, 1]} : vector<18x48xbf16> to vector<16x48xbf16>
    %4 = vector.extract_strided_slice %1 {offsets = [2, 0], sizes = [16, 48], strides = [1, 1]} : vector<18x48xbf16> to vector<16x48xbf16>
    %5 = tpu.concatenate %2, %3, %4 in 1 : vector<16x48xbf16>, vector<16x48xbf16>, vector<16x48xbf16> -> vector<16x144xbf16>
    %c0_2 = arith.constant 0 : index
    %c0_3 = arith.constant 0 : index
    %6 = vector.load %arg2[%c0_2, %c0_3] : memref<144x256xbf16, #tpu.memory_space<vmem>>, vector<144x256xbf16>
    %cst = arith.constant dense<0.000000e+00> : vector<16x256xf32>
    %7 = tpu.matmul %5, %6, %cst {dimension_numbers = #tpu.dot_dimension_numbers<[1], [0], [0], [1], [0, 0, 1, 1], [], []>} : vector<16x144xbf16>, vector<144x256xbf16>, vector<16x256xf32> -> vector<16x256xf32>
    %c0_4 = arith.constant 0 : index
    %c0_5 = arith.constant 0 : index
    %8 = vector.load %arg3[%c0_4, %c0_5] : memref<1x256xf32, #tpu.memory_space<vmem>>, vector<1x256xf32>
    %9 = vector.broadcast %8 : vector<1x256xf32> to vector<16x256xf32>
    %10 = arith.addf %7, %9 : vector<16x256xf32>
    %cst_6 = arith.constant 0.000000e+00 : f32
    %11 = vector.broadcast %cst_6 : f32 to vector<16x256xf32>
    %12 = arith.maximumf %10, %11 : vector<16x256xf32>
    %13 = arith.truncf %12 : vector<16x256xf32> to vector<16x256xbf16>
    %c0_7 = arith.constant 0 : index
    %c0_8 = arith.constant 0 : index
    %14 = vector.load %arg4[%c0_7, %c0_8] : memref<256x128xbf16, #tpu.memory_space<vmem>>, vector<256x128xbf16>
    %cst_9 = arith.constant dense<0.000000e+00> : vector<16x128xf32>
    %15 = tpu.matmul %13, %14, %cst_9 {dimension_numbers = #tpu.dot_dimension_numbers<[1], [0], [0], [1], [0, 0, 1, 1], [], []>} : vector<16x256xbf16>, vector<256x128xbf16>, vector<16x128xf32> -> vector<16x128xf32>
    %c0_10 = arith.constant 0 : index
    %c0_11 = arith.constant 0 : index
    %16 = vector.load %arg5[%c0_10, %c0_11] : memref<256x128xbf16, #tpu.memory_space<vmem>>, vector<256x128xbf16>
    %cst_12 = arith.constant dense<0.000000e+00> : vector<16x128xf32>
    %17 = tpu.matmul %13, %16, %cst_12 {dimension_numbers = #tpu.dot_dimension_numbers<[1], [0], [0], [1], [0, 0, 1, 1], [], []>} : vector<16x256xbf16>, vector<256x128xbf16>, vector<16x128xf32> -> vector<16x128xf32>
    %18 = arith.maximumf %15, %17 : vector<16x128xf32>
    %19 = vector.extract_strided_slice %18 {offsets = [0, 0], sizes = [15, 128], strides = [1, 1]} : vector<16x128xf32> to vector<15x128xf32>
    %20 = vector.extract_strided_slice %18 {offsets = [1, 0], sizes = [15, 128], strides = [1, 1]} : vector<16x128xf32> to vector<15x128xf32>
    %21 = arith.maximumf %19, %20 : vector<15x128xf32>
    %22 = arith.truncf %21 : vector<15x128xf32> to vector<15x128xbf16>
    %c0_13 = arith.constant 0 : index
    %c0_14 = arith.constant 0 : index
    %23 = vector.load %arg6[%c0_13, %c0_14] : memref<10x15xbf16, #tpu.memory_space<vmem>>, vector<10x15xbf16>
    %cst_15 = arith.constant dense<0.000000e+00> : vector<10x128xf32>
    %24 = tpu.matmul %23, %22, %cst_15 {dimension_numbers = #tpu.dot_dimension_numbers<[1], [0], [0], [1], [0, 0, 1, 1], [], []>} : vector<10x15xbf16>, vector<15x128xbf16>, vector<10x128xf32> -> vector<10x128xf32>
    %25 = arith.truncf %24 : vector<10x128xf32> to vector<10x128xbf16>
    %26 = vector.extract_strided_slice %25 {offsets = [0, 0], sizes = [8, 128], strides = [1, 1]} : vector<10x128xbf16> to vector<8x128xbf16>
    %27 = vector.extract_strided_slice %25 {offsets = [1, 0], sizes = [8, 128], strides = [1, 1]} : vector<10x128xbf16> to vector<8x128xbf16>
    %28 = vector.extract_strided_slice %25 {offsets = [2, 0], sizes = [8, 128], strides = [1, 1]} : vector<10x128xbf16> to vector<8x128xbf16>
    %29 = tpu.concatenate %26, %27, %28 in 1 : vector<8x128xbf16>, vector<8x128xbf16>, vector<8x128xbf16> -> vector<8x384xbf16>
    %c0_16 = arith.constant 0 : index
    %c0_17 = arith.constant 0 : index
    %30 = vector.load %arg7[%c0_16, %c0_17] : memref<384x256xbf16, #tpu.memory_space<vmem>>, vector<384x256xbf16>
    %cst_18 = arith.constant dense<0.000000e+00> : vector<8x256xf32>
    %31 = tpu.matmul %29, %30, %cst_18 {dimension_numbers = #tpu.dot_dimension_numbers<[1], [0], [0], [1], [0, 0, 1, 1], [], []>} : vector<8x384xbf16>, vector<384x256xbf16>, vector<8x256xf32> -> vector<8x256xf32>
    %c0_19 = arith.constant 0 : index
    %c0_20 = arith.constant 0 : index
    %32 = vector.load %arg8[%c0_19, %c0_20] : memref<1x256xf32, #tpu.memory_space<vmem>>, vector<1x256xf32>
    %33 = vector.broadcast %32 : vector<1x256xf32> to vector<8x256xf32>
    %34 = arith.addf %31, %33 : vector<8x256xf32>
    %cst_21 = arith.constant 0.000000e+00 : f32
    %35 = vector.broadcast %cst_21 : f32 to vector<8x256xf32>
    %36 = arith.maximumf %34, %35 : vector<8x256xf32>
    %37 = arith.truncf %36 : vector<8x256xf32> to vector<8x256xbf16>
    %c0_22 = arith.constant 0 : index
    %c0_23 = arith.constant 0 : index
    %38 = vector.load %arg9[%c0_22, %c0_23] : memref<256x128xbf16, #tpu.memory_space<vmem>>, vector<256x128xbf16>
    %cst_24 = arith.constant dense<0.000000e+00> : vector<8x128xf32>
    %39 = tpu.matmul %37, %38, %cst_24 {dimension_numbers = #tpu.dot_dimension_numbers<[1], [0], [0], [1], [0, 0, 1, 1], [], []>} : vector<8x256xbf16>, vector<256x128xbf16>, vector<8x128xf32> -> vector<8x128xf32>
    %c0_25 = arith.constant 0 : index
    %c0_26 = arith.constant 0 : index
    %40 = vector.load %arg10[%c0_25, %c0_26] : memref<256x128xbf16, #tpu.memory_space<vmem>>, vector<256x128xbf16>
    %cst_27 = arith.constant dense<0.000000e+00> : vector<8x128xf32>
    %41 = tpu.matmul %37, %40, %cst_27 {dimension_numbers = #tpu.dot_dimension_numbers<[1], [0], [0], [1], [0, 0, 1, 1], [], []>} : vector<8x256xbf16>, vector<256x128xbf16>, vector<8x128xf32> -> vector<8x128xf32>
    %42 = arith.maximumf %39, %41 : vector<8x128xf32>
    %43 = vector.extract_strided_slice %42 {offsets = [0, 0], sizes = [7, 128], strides = [1, 1]} : vector<8x128xf32> to vector<7x128xf32>
    %44 = vector.extract_strided_slice %42 {offsets = [1, 0], sizes = [7, 128], strides = [1, 1]} : vector<8x128xf32> to vector<7x128xf32>
    %45 = arith.maximumf %43, %44 : vector<7x128xf32>
    %46 = arith.truncf %45 : vector<7x128xf32> to vector<7x128xbf16>
    %c0_28 = arith.constant 0 : index
    %c0_29 = arith.constant 0 : index
    %47 = vector.load %arg11[%c0_28, %c0_29] : memref<4x7xbf16, #tpu.memory_space<vmem>>, vector<4x7xbf16>
    %cst_30 = arith.constant dense<0.000000e+00> : vector<4x128xf32>
    %48 = tpu.matmul %47, %46, %cst_30 {dimension_numbers = #tpu.dot_dimension_numbers<[1], [0], [0], [1], [0, 0, 1, 1], [], []>} : vector<4x7xbf16>, vector<7x128xbf16>, vector<4x128xf32> -> vector<4x128xf32>
    %49 = arith.truncf %48 : vector<4x128xf32> to vector<4x128xbf16>
    %c0_31 = arith.constant 0 : index
    %c0_32 = arith.constant 0 : index
    %50 = vector.load %arg12[%c0_31, %c0_32] : memref<128x256xbf16, #tpu.memory_space<vmem>>, vector<128x256xbf16>
    %cst_33 = arith.constant dense<0.000000e+00> : vector<4x256xf32>
    %51 = tpu.matmul %49, %50, %cst_33 {dimension_numbers = #tpu.dot_dimension_numbers<[1], [0], [0], [1], [0, 0, 1, 1], [], []>} : vector<4x128xbf16>, vector<128x256xbf16>, vector<4x256xf32> -> vector<4x256xf32>
    %c0_34 = arith.constant 0 : index
    %c0_35 = arith.constant 0 : index
    %52 = vector.load %arg13[%c0_34, %c0_35] : memref<1x256xf32, #tpu.memory_space<vmem>>, vector<1x256xf32>
    %53 = vector.broadcast %52 : vector<1x256xf32> to vector<4x256xf32>
    %54 = arith.addf %51, %53 : vector<4x256xf32>
    %cst_36 = arith.constant 0.000000e+00 : f32
    %55 = vector.broadcast %cst_36 : f32 to vector<4x256xf32>
    %56 = arith.maximumf %54, %55 : vector<4x256xf32>
    %57 = arith.truncf %56 : vector<4x256xf32> to vector<4x256xbf16>
    %c0_37 = arith.constant 0 : index
    %c0_38 = arith.constant 0 : index
    %58 = vector.load %arg14[%c0_37, %c0_38] : memref<256x256xbf16, #tpu.memory_space<vmem>>, vector<256x256xbf16>
    %cst_39 = arith.constant dense<0.000000e+00> : vector<4x256xf32>
    %59 = tpu.matmul %57, %58, %cst_39 {dimension_numbers = #tpu.dot_dimension_numbers<[1], [0], [0], [1], [0, 0, 1, 1], [], []>} : vector<4x256xbf16>, vector<256x256xbf16>, vector<4x256xf32> -> vector<4x256xf32>
    %c0_40 = arith.constant 0 : index
    %c0_41 = arith.constant 0 : index
    %60 = vector.load %arg15[%c0_40, %c0_41] : memref<1x256xf32, #tpu.memory_space<vmem>>, vector<1x256xf32>
    %61 = vector.broadcast %60 : vector<1x256xf32> to vector<4x256xf32>
    %62 = arith.addf %59, %61 : vector<4x256xf32>
    %cst_42 = arith.constant 5.000000e-01 : f32
    %63 = vector.broadcast %cst_42 : f32 to vector<4x256xf32>
    %64 = arith.mulf %63, %62 : vector<4x256xf32>
    %65 = math.tanh %64 : vector<4x256xf32>
    %cst_43 = arith.constant 5.000000e-01 : f32
    %66 = vector.broadcast %cst_43 : f32 to vector<4x256xf32>
    %67 = arith.mulf %66, %65 : vector<4x256xf32>
    %cst_44 = arith.constant 5.000000e-01 : f32
    %68 = vector.broadcast %cst_44 : f32 to vector<4x256xf32>
    %69 = arith.addf %67, %68 : vector<4x256xf32>
    %c0_45 = arith.constant 0 : index
    %c0_46 = arith.constant 0 : index
    %c0_47 = arith.constant 0 : index
    %70 = vector.load %arg16[%c0_45, %c0_46, %c0_47] : memref<1x4x256xf32, #tpu.memory_space<vmem>>, vector<1x4x256xf32>
    %71 = vector.shape_cast %70 : vector<1x4x256xf32> to vector<4x256xf32>
    %72 = vector.shape_cast %69 : vector<4x256xf32> to vector<1x4x256xf32>
    tpu.vector_store %arg16[%c0_45, %c0_46, %c0_47], %72 {strides = array<i32>} : memref<1x4x256xf32, #tpu.memory_space<vmem>>, vector<1x4x256xf32>,
    return
  }
  func.func @transform_0(%arg0: i32) -> (i32, i32, i32) {
    %c0_i32 = arith.constant 0 : i32
    %c0_i32_0 = arith.constant 0 : i32
    %c0_i32_1 = arith.constant 0 : i32
    return %arg0, %c0_i32, %c0_i32_0 : i32, i32, i32
  }
  func.func @transform_1(%arg0: i32) -> (i32, i32) {
    %c0_i32 = arith.constant 0 : i32
    %c0_i32_0 = arith.constant 0 : i32
    %c0_i32_1 = arith.constant 0 : i32
    return %c0_i32, %c0_i32_0 : i32, i32
  }
  func.func @transform_2(%arg0: i32) -> (i32, i32) {
    %c0_i32 = arith.constant 0 : i32
    %c0_i32_0 = arith.constant 0 : i32
    %c0_i32_1 = arith.constant 0 : i32
    return %c0_i32, %c0_i32_0 : i32, i32
  }
  func.func @transform_3(%arg0: i32) -> (i32, i32) {
    %c0_i32 = arith.constant 0 : i32
    %c0_i32_0 = arith.constant 0 : i32
    %c0_i32_1 = arith.constant 0 : i32
    return %c0_i32, %c0_i32_0 : i32, i32
  }
  func.func @transform_4(%arg0: i32) -> (i32, i32) {
    %c0_i32 = arith.constant 0 : i32
    %c0_i32_0 = arith.constant 0 : i32
    %c0_i32_1 = arith.constant 0 : i32
    return %c0_i32, %c0_i32_0 : i32, i32
  }
  func.func @transform_5(%arg0: i32) -> (i32, i32) {
    %c0_i32 = arith.constant 0 : i32
    %c0_i32_0 = arith.constant 0 : i32
    %c0_i32_1 = arith.constant 0 : i32
    return %c0_i32, %c0_i32_0 : i32, i32
  }
  func.func @transform_6(%arg0: i32) -> (i32, i32) {
    %c0_i32 = arith.constant 0 : i32
    %c0_i32_0 = arith.constant 0 : i32
    %c0_i32_1 = arith.constant 0 : i32
    return %c0_i32, %c0_i32_0 : i32, i32
  }
  func.func @transform_7(%arg0: i32) -> (i32, i32) {
    %c0_i32 = arith.constant 0 : i32
    %c0_i32_0 = arith.constant 0 : i32
    %c0_i32_1 = arith.constant 0 : i32
    return %c0_i32, %c0_i32_0 : i32, i32
  }
  func.func @transform_8(%arg0: i32) -> (i32, i32) {
    %c0_i32 = arith.constant 0 : i32
    %c0_i32_0 = arith.constant 0 : i32
    %c0_i32_1 = arith.constant 0 : i32
    return %c0_i32, %c0_i32_0 : i32, i32
  }
  func.func @transform_9(%arg0: i32) -> (i32, i32) {
    %c0_i32 = arith.constant 0 : i32
    %c0_i32_0 = arith.constant 0 : i32
    %c0_i32_1 = arith.constant 0 : i32
    return %c0_i32, %c0_i32_0 : i32, i32
  }
  func.func @transform_10(%arg0: i32) -> (i32, i32) {
    %c0_i32 = arith.constant 0 : i32
    %c0_i32_0 = arith.constant 0 : i32
    %c0_i32_1 = arith.constant 0 : i32
    return %c0_i32, %c0_i32_0 : i32, i32
  }
  func.func @transform_11(%arg0: i32) -> (i32, i32) {
    %c0_i32 = arith.constant 0 : i32
    %c0_i32_0 = arith.constant 0 : i32
    %c0_i32_1 = arith.constant 0 : i32
    return %c0_i32, %c0_i32_0 : i32, i32
  }
  func.func @transform_12(%arg0: i32) -> (i32, i32) {
    %c0_i32 = arith.constant 0 : i32
    %c0_i32_0 = arith.constant 0 : i32
    %c0_i32_1 = arith.constant 0 : i32
    return %c0_i32, %c0_i32_0 : i32, i32
  }
  func.func @transform_13(%arg0: i32) -> (i32, i32) {
    %c0_i32 = arith.constant 0 : i32
    %c0_i32_0 = arith.constant 0 : i32
    %c0_i32_1 = arith.constant 0 : i32
    return %c0_i32, %c0_i32_0 : i32, i32
  }
  func.func @transform_14(%arg0: i32) -> (i32, i32) {
    %c0_i32 = arith.constant 0 : i32
    %c0_i32_0 = arith.constant 0 : i32
    %c0_i32_1 = arith.constant 0 : i32
    return %c0_i32, %c0_i32_0 : i32, i32
  }
  func.func @transform_15(%arg0: i32) -> (i32, i32, i32) {
    %c0_i32 = arith.constant 0 : i32
    %c0_i32_0 = arith.constant 0 : i32
    %c0_i32_1 = arith.constant 0 : i32
    return %arg0, %c0_i32, %c0_i32_0 : i32, i32, i32
  }
}

</mosaic_0001>

<bundles_post_ra>
// kernel: model_forward.1
= control target key start
LH: loop header
LB: loop body
LE: loop exit
PB: predicated region body
PF: predicated region fallthrough
CT: control target
= control target key end

     0   :  { %s3826_s0 = inlined_call_operand.vmem [shape: bf16[2,18,48], index: 0, kind: input, shape index: {}]   ;;  %s3827_s1 = inlined_call_operand.hbm [shape: bf16[144,256], index: 1, kind: input, shape index: {}]   ;;  %s3828_s2 = inlined_call_operand.vmem [shape: f32[1,256], index: 2, kind: input, shape index: {}]   ;;  %s3829_s3 = inlined_call_operand.hbm [shape: bf16[256,128], index: 3, kind: input, shape index: {}]   ;;  %s3830_s4 = inlined_call_operand.hbm [shape: bf16[256,128], index: 4, kind: input, shape index: {}]   ;;  %s3831_s5 = inlined_call_operand.vmem [shape: bf16[10,15], index: 5, kind: input, shape index: {}]   ;;  %s3832_s6 = inlined_call_operand.vmem [shape: bf16[384,256], index: 6, kind: input, shape index: {}]   ;;  %s3833_s7 = inlined_call_operand.vmem [shape: f32[1,256], index: 7, kind: input, shape index: {}]   ;;  %s3834_s8 = inlined_call_operand.hbm [shape: bf16[256,128], index: 8, kind: input, shape index: {}]   ;;  %s3835_s9 = inlined_call_operand.hbm [shape: bf16[256,128], index: 9, kind: input, shape index: {}]   ;;  %s3836_s10 = inlined_call_operand.vmem [shape: bf16[4,7], index: 10, kind: input, shape index: {}]   ;;  %s3837_s11 = inlined_call_operand.hbm [shape: bf16[128,256], index: 11, kind: input, shape index: {}]   ;;  %s3838_s12 = inlined_call_operand.vmem [shape: f32[1,256], index: 12, kind: input, shape index: {}]   ;;  %s3839_s13 = inlined_call_operand.hbm [shape: bf16[256,256], index: 13, kind: input, shape index: {}]   ;;  %s3840_s14 = inlined_call_operand.vmem [shape: f32[1,256], index: 14, kind: input, shape index: {}]   ;;  %s3841_s15 = inlined_call_operand.vmem [shape: f32[2,4,256], index: 15, kind: output, shape index: {}]  }
   0x1   :  { %3846 = sst [smem:[#allocation17_spill]] %s3829_s3 }
   0x2   :  { %20 = vsyncpa [#allocation3], 0 }
   0x3   :  { %21 = vsyncpa [#allocation5], 0 }
   0x4   :  { %22 = vsyncpa [#allocation8], 0 }
   0x5   :  { %23 = vsyncpa [#allocation11], 0  ;;  %s3494_s18 = smov 0  }
   0x6 LB: > { %s3397_s19 = smov [#allocation4]   ;;  %s3500_s21 = sadd.s32 4294967295, %s3395_s18   ;;  %s3395_s18 = sphi %s3494_s18, %s29_s18  }
   0x7   : > { %s408_s20 = sshll.u32 %s3397_s19, 4  ;;  %p2548_p0 = scmp.ge.s32.totalorder %s3395_s18, 1  ;;  %s409_s20 = int_to_ptr.vmem [resolvable:$true] %s408_s20 }
   0x8   : > { %p380_p1 = scmp.lt.s32.totalorder %s3395_s18, 3  ;;  %p2910_p2 = scmp.eq.s32.totalorder %s3500_s21, 0 }
   0x9   : > { %s3398_s23 = smov [#allocation7]   ;;  %s3399_s26 = smov [#allocation10]  }
   0xa   : > { %p3505_p3 = pnand %p2548_p0, %p380_p1  ;;  %s443_s24 = sshll.u32 %s3398_s23, 4  ;;  %s3511_s24 = int_to_ptr.vmem [resolvable:$true] %s443_s24 }
   0xb   : > { %s472_s27 = sshll.u32 %s3399_s26, 4  ;;  %s3202_s29 = scalar_lea.vmem %s409_s20, 2048  ;;  %s473_s27 = int_to_ptr.vmem [resolvable:$true] %s472_s27 }
   0xc   : > { %p2888_p4 = pneg %p3505_p3  ;;  %p3203_p7 = scmp.ne.s32.totalorder %s409_s20, %s3202_s29 }
   0xd   : > { %p3210_p10 = scmp.lt.s32.totalorder %s409_s20, %s409_s20  ;;  %p3211_p11 = scmp.lt.s32.totalorder %s3202_s29, %s3202_s29 }
   0xe   : > { %p3515_p5 = pnand %p2910_p2, %p2888_p4 }
   0xf   : > { %p3212_p12 = por %p3211_p11, %p3210_p10 }
  0x10   : > { %p3521_p6 = pneg %p3515_p5 }
  0x12   : > { %p3205_p8 = pnand %p3203_p7, %p3521_p6 }
  0x14   : > { %p3206_p9 = pneg %p3205_p8 }
  0x16   : > { %p3213_p13 = pnand %p3212_p12, %p3206_p9 }
  0x18   : > { %3216 = shalt.err (!%p3213_p13)
}
  0x19   : > { %s3842_s30 = smov 64   ;;  %s3844_s16 = smov 4  }
  0x1a   : > { %s3850_s3 = sld [smem:[#allocation17_spill]]  ;;  %s3228_s23 = scalar_lea.vmem %s3511_s24, 2048 }
  0x1b   : > { %p3229_p0 = scmp.ne.s32.totalorder %s3511_s24, %s3228_s23  ;;  %p3236_p7 = scmp.lt.s32.totalorder %s3511_s24, %s3511_s24 }
  0x1c   : > { %p3237_p8 = scmp.lt.s32.totalorder %s3228_s23, %s3228_s23 }
  0x1d   : > { %p3231_p1 = pnand %p3229_p0, %p3521_p6 }
  0x1e   : > { %p3238_p9 = por %p3237_p8, %p3236_p7 }
  0x1f   : > { %p3232_p4 = pneg %p3231_p1 }
  0x20   : > { %2894 = dma.hbm_to_vmem [thread:$0]  (!%p3515_p5), %s3850_s3, 2048, %s409_s20, [#allocation5], %s3842_s30, %s3842_s30, %s3844_s16  }
  0x21   : > { %p3239_p10 = pnand %p3238_p9, %p3232_p4 }
  0x23   : > { %3242 = shalt.err (!%p3239_p10)
}
  0x24   : > { %2900 = dma.hbm_to_vmem [thread:$0]  (!%p3515_p5), %s3834_s8, 2048, %s3511_s24, [#allocation8], %s3842_s30, %s3842_s30, %s3844_s16  }
  0x25   : > { %s3402_s20 = smov [#allocation2]   ;;  %s3254_s19 = scalar_lea.vmem %s473_s27, 2048 }
  0x26   : > { %s392_s17 = sshll.u32 %s3402_s20, 4  ;;  %p3255_p11 = scmp.ne.s32.totalorder %s473_s27, %s3254_s19  ;;  %s393_s17 = int_to_ptr.vmem [resolvable:$true] %s392_s17 }
  0x27   : > { %p3262_p0 = scmp.lt.s32.totalorder %s473_s27, %s473_s27  ;;  %p3263_p1 = scmp.lt.s32.totalorder %s3254_s19, %s3254_s19 }
  0x28   : > { %p3257_p12 = pnand %p3255_p11, %p3521_p6 }
  0x29   : > { %p3264_p4 = por %p3263_p1, %p3262_p0 }
  0x2a   : > { %p3258_p13 = pneg %p3257_p12 }
  0x2c   : > { %p3265_p7 = pnand %p3264_p4, %p3258_p13 }
  0x2e   : > { %3268 = shalt.err (!%p3265_p7)
}
  0x2f   : > { %s3403_s23 = smov 128   ;;  %s3404_s3 = smov 8  }
  0x30   : > { %2906 = dma.hbm_to_vmem [thread:$0]  (!%p3515_p5), %s3837_s11, 2048, %s473_s27, [#allocation11], %s3403_s23, %s3403_s23, %s3404_s3  }
  0x31   : > { %s3280_s29 = scalar_lea.vmem %s393_s17, 2304  ;;  %p3288_p11 = scmp.lt.s32.totalorder %s393_s17, %s393_s17 }
  0x32   : > { %p3281_p8 = scmp.ne.s32.totalorder %s393_s17, %s3280_s29  ;;  %p3289_p12 = scmp.lt.s32.totalorder %s3280_s29, %s3280_s29 }
  0x34   : > { %p3283_p9 = pnand %p3281_p8, %p3521_p6  ;;  %p3290_p13 = por %p3289_p12, %p3288_p11 }
  0x36   : > { %p3284_p10 = pneg %p3283_p9 }
  0x38   : > { %p3291_p0 = pnand %p3290_p13, %p3284_p10 }
  0x3a   : > { %3294 = shalt.err (!%p3291_p0)
}
  0x3b   : > { %2891 = dma.hbm_to_vmem [thread:$0]  (!%p3515_p5), %s3827_s1, 2304, %s393_s17, [#allocation3], %s3403_s23, %s3403_s23, %s3404_s3  }
  0x3c   : > { %s3405_s27 = smov [#allocation6]   ;;  %s3406_s26 = smov [#allocation9]  }
  0x3d   : > { %s421_s24 = sshll.u32 %s3405_s27, 4  ;;  %s456_s30 = sshll.u32 %s3406_s26, 4  ;;  %s422_s24 = int_to_ptr.vmem [resolvable:$true] %s421_s24  ;;  %s457_s30 = int_to_ptr.vmem [resolvable:$true] %s456_s30 }
  0x3e   : > { %s3306_s16 = scalar_lea.vmem %s422_s24, 2048  ;;  %p3314_p8 = scmp.lt.s32.totalorder %s422_s24, %s422_s24 }
  0x3f   : > { %p3307_p1 = scmp.ne.s32.totalorder %s422_s24, %s3306_s16  ;;  %p3315_p9 = scmp.lt.s32.totalorder %s3306_s16, %s3306_s16 }
  0x41   : > { %p3309_p4 = pnand %p3307_p1, %p3521_p6  ;;  %p3316_p10 = por %p3315_p9, %p3314_p8 }
  0x43   : > { %p3310_p7 = pneg %p3309_p4 }
  0x45   : > { %p3317_p11 = pnand %p3316_p10, %p3310_p7 }
  0x47   : > { %3320 = shalt.err (!%p3317_p11)
}
  0x48   : > { %s3851_s29 = smov 4   ;;  %s3852_s20 = smov 64  }
  0x49   : > { %2897 = dma.hbm_to_vmem [thread:$0]  (!%p3515_p5), %s3830_s4, 2048, %s422_s24, [#allocation5], %s3852_s20, %s3852_s20, %s3851_s29  }
  0x4a   : > { %s3332_s27 = scalar_lea.vmem %s457_s30, 2048  ;;  %p3340_p1 = scmp.lt.s32.totalorder %s457_s30, %s457_s30 }
  0x4b   : > { %p3333_p12 = scmp.ne.s32.totalorder %s457_s30, %s3332_s27  ;;  %p3341_p4 = scmp.lt.s32.totalorder %s3332_s27, %s3332_s27 }
  0x4d   : > { %p3335_p13 = pnand %p3333_p12, %p3521_p6  ;;  %p3342_p7 = por %p3341_p4, %p3340_p1 }
  0x4f   : > { %p3336_p0 = pneg %p3335_p13 }
  0x51   : > { %p3343_p8 = pnand %p3342_p7, %p3336_p0 }
  0x53   : > { %3346 = shalt.err (!%p3343_p8)
}
  0x54   : > { %2903 = dma.hbm_to_vmem [thread:$0]  (!%p3515_p5), %s3835_s9, 2048, %s457_s30, [#allocation8], %s3852_s20, %s3852_s20, %s3851_s29  }
  0x55   : > { %s3407_s24 = smov [#allocation12]  }
  0x56   : > { %s488_s17 = sshll.u32 %s3407_s24, 4  ;;  %s489_s17 = int_to_ptr.vmem [resolvable:$true] %s488_s17 }
  0x57   : > { %s3358_s19 = scalar_lea.vmem %s489_s17, 4096  ;;  %p3366_p12 = scmp.lt.s32.totalorder %s489_s17, %s489_s17 }
  0x58   : > { %p3359_p9 = scmp.ne.s32.totalorder %s489_s17, %s3358_s19  ;;  %p3367_p13 = scmp.lt.s32.totalorder %s3358_s19, %s3358_s19 }
  0x5a   : > { %p3361_p10 = pnand %p3359_p9, %p3521_p6  ;;  %p3368_p0 = por %p3367_p13, %p3366_p12 }
  0x5c   : > { %p3362_p11 = pneg %p3361_p10 }
  0x5e   : > { %p3369_p1 = pnand %p3368_p0, %p3362_p11 }
  0x60   : > { %3372 = shalt.err (!%p3369_p1)
}
  0x61   : > { %2909 = dma.hbm_to_vmem [thread:$0]  (!%p3515_p5), %s3839_s13, 4096, %s489_s17, [#allocation11], %s3403_s23, %s3403_s23, %s3404_s3  }
  0x62   : > { %515 = sbr.rel (%p3505_p3) target bundleno = 1934 (0x78e), region = 80 }
  0x67   : > { %3378 = dma.done.wait (%p2910_p2), [#allocation3], 2304  }
  0x68   : > { %3380 = vsyncadd (%p2910_p2), [#allocation3], 4294964992 }
  0x69   : > { %3382 = dma.done.wait (%p2910_p2), [#allocation5], 4096  }
  0x6a   : > { %3384 = vsyncadd (%p2910_p2), [#allocation5], 4294963200 }
  0x6b   : > { %3386 = dma.done.wait (%p2910_p2), [#allocation8], 4096  }
  0x6c   : > { %3388 = vsyncadd (%p2910_p2), [#allocation8], 4294963200 }
  0x6d   : > { %3390 = dma.done.wait (%p2910_p2), [#allocation11], 6144  }
  0x6e   : > { %3392 = vsyncadd (%p2910_p2), [#allocation11], 4294961152  ;;  %p587_p3 = scmp.lt.s32.totalorder %s3500_s21, 1  ;;  %v2951_v2 = vld [vmem:[#allocation2 + $0x74] ss:$8 sps:$4 sm:$0xff]   ;;  %vm624_vm1 = vcmask 1046528   ;;  %v657_v51 = vlaneseq }
  0x6f   : > { %v2953_v3 = vld [vmem:[#allocation2 + $0x70] ss:$8 sps:$4 sm:$0xff]   ;;  %760 = vmatprep.subr.bf16.mxu0 %v2951_v2  ;;  %v2954_v7 = vld [vmem:[#allocation2 + $0x64] ss:$8 sps:$4 sm:$0xff]   ;;  %v2956_v10 = vld [vmem:[#allocation2 + $0x60] ss:$8 sps:$4 sm:$0xff]  }
  0x70   : > { %s3854_s21 = smov (!%p587_p3, %s3500_s21), 1  ;;  %761 = vmatpush1.bf16.msra.mxu0 %v2953_v3  ;;  %vm609_vm0 = vsmask.f32 7424  ;;  %v2957_v11 = vld [vmem:[#allocation2 + $0x54] ss:$8 sps:$4 sm:$0xff]   ;;  %s3408_s23 = smov 48  }
  0x71   : > { %s2859_s3 = smul.u32 12, %s3854_s21  ;;  %762 = vmatprep.subr.bf16.mxu0 %v2954_v7  ;;  %v2959_v16 = vld [vmem:[#allocation2 + $0x50] ss:$8 sps:$4 sm:$0xff]   ;;  %v2960_v17 = vld [vmem:[#allocation2 + $0x44] ss:$8 sps:$4 sm:$0xff]   ;;  %s3409_s29 = smov 96  }
  0x72   : > { %v2962_v19 = vld [vmem:[#allocation2 + $0x40] ss:$8 sps:$4 sm:$0xff]   ;;  %v2963_v20 = vld [vmem:[#allocation2 + $0x34] ss:$8 sps:$4 sm:$0xff]   ;;  %v2965_v22 = vld [vmem:[#allocation2 + $0x30] ss:$8 sps:$4 sm:$0xff]  }
  0x73   : > { %s591_s28 = scalar_lea.vmem %s3826_s0, %s2859_s3  ;;  %v2978_v21 = vld [vmem:[#allocation4 + $0x78] sm:$0xff]   ;;  %v2980_v25 = vld [vmem:[#allocation4 + $0x70] sm:$0xff]   ;;  %v2982_v27 = vld [vmem:[#allocation4 + $0x68] sm:$0xff]   ;;  %vm630_vm2 = vcmask 392192   ;;  %vm757_vm3 = vcmask 130048   ;;  %vm633_vm4 = vcmask 785408  }
  0x74   : > { %v3626_v0 = vld [vmem:[%s591_s28] sm:$0xff]   ;;  %v2950_v1 = vld [vmem:[%s591_s28 + $0x8] ss:$0 sps:$4 sm:$0x11]   ;;  %763 = vmatpush1.bf16.msra.mxu0 %v2956_v10  ;;  %2755 = vmatprep.subr.bf16.mxu1 %v2978_v21  ;;  %v2969_v29 = vld [vmem:[#allocation2 + $0x14] ss:$8 sps:$4 sm:$0xff]  }
  0x75   : > { %v611_v4 = vshrl.u32 %v3626_v0, 16  ;;  %v613_v5 = vshll.u32 %v3626_v0, 16  ;;  %v618_v6 = vshll.u32 %v2950_v1, 16  ;;  %v625_v13 = vrot.slane %v3626_v0, 1  ;;  %764 = vmatprep.subr.bf16.mxu0 %v2957_v11  ;;  %v2979_v23 = vld [vmem:[#allocation4 + $0x38] sm:$0xff]   ;;  %v2981_v26 = vld [vmem:[#allocation4 + $0x30] sm:$0xff]  }
  0x76   : > { %v626_v14 = vrot.slane %v2950_v1, 1  ;;  %v2966_v24 = vld [vmem:[#allocation2 + $0x24] ss:$8 sps:$4 sm:$0xff]   ;;  %2756 = vmatpush3.bf16.msra.mxu1 %v2979_v23  ;;  %v2968_v28 = vld [vmem:[#allocation2 + $0x20] ss:$8 sps:$4 sm:$0xff]   ;;  %v2983_v30 = vld [vmem:[#allocation4 + $0x28] sm:$0xff]  }
  0x77   : > { %v615_v8 = vrot.slane %v613_v5, 1  ;;  %v620_v9 = vrot.slane %v618_v6, 1  ;;  %2757 = vmatprep.subr.bf16.mxu1 %v2980_v25  ;;  %v2984_v31 = vld [vmem:[#allocation4 + $0x60] sm:$0xff]   ;;  %v2972_v34 = vld [vmem:[#allocation2 + $0x4] ss:$8 sps:$4 sm:$0xff]   ;;  %v2990_v46 = vld [vmem:[#allocation4 + $0x48] sm:$0xff]  }
  0x78   : > { %v627_v18 = vsel %vm624_vm1, %v625_v13, %v626_v14  ;;  %765 = vmatpush1.bf16.msra.mxu0 %v2959_v16  ;;  %v2971_v32 = vld [vmem:[#allocation2 + $0x10] ss:$8 sps:$4 sm:$0xff]   ;;  %v2986_v35 = vld [vmem:[#allocation4 + $0x58] sm:$0xff]   ;;  %v2988_v44 = vld [vmem:[#allocation4 + $0x50] sm:$0xff]   ;;  %v658_v52 = vshrl.u32 %v657_v51, 7  ;;  %v3410_v23 = vmov 0.0  }
  0x79   : > { %v616_v12 = vor.u32 %v615_v8, %v611_v4  ;;  %766 = vmatprep.subr.bf16.mxu0 %v2960_v17  ;;  %v2985_v33 = vld [vmem:[#allocation4 + $0x20] sm:$0xff]   ;;  %v2974_v36 = vld [vmem:[#allocation2] ss:$8 sps:$4 sm:$0xff]   ;;  %v2975_v38 = vld [vmem:[#allocation2 + $0x84] ss:$8 sps:$4 sm:$0xff]   ;;  %vm3411_vm5 = vmmov 0  }
  0x7a   : > { %2758 = vmatpush3.bf16.msra.mxu1 %v2981_v26  ;;  %v2987_v37 = vld [vmem:[#allocation4 + $0x18] sm:$0xff]   ;;  %v2989_v45 = vld [vmem:[#allocation4 + $0x10] sm:$0xff]   ;;  %v2991_v47 = vld [vmem:[#allocation4 + $0x8] sm:$0xff]   ;;  %v3633_v53 = vsub.s32 1, %v658_v52  ;;  %v3635_v54 = vsub.s32 0, %v658_v52  ;;  %vm1171_vm6 = vcmask 1047552  }
  0x7b   : > { %v621_v15 = vsel %vm609_vm0, %v616_v12, %v620_v9  ;;  %2759 = vmatprep.subr.bf16.mxu1 %v2982_v27  ;;  %v2977_v39 = vld [vmem:[#allocation2 + $0x80] ss:$8 sps:$4 sm:$0xff]   ;;  %v2992_v48 = vld [vmem:[#allocation4 + $0x40] sm:$0xff]   ;;  %v2998_v11 = vld [vmem:[#allocation6 + $0x68] sm:$0xff]   ;;  %vm1167_vm7 = vcmask 121856   ;;  %vm1963_vm8 = vcmask 1042432  }
  0x7c   : > { %622 = vrot.lane.b32.xlu0 %v621_v15, %s3408_s23  ;;  %767 = vmatpush1.bf16.msra.mxu0 %v2962_v19  ;;  %v2993_v49 = vld [vmem:[#allocation4] sm:$0xff]   ;;  %v2994_v50 = vld [vmem:[#allocation6 + $0x78] sm:$0xff]   ;;  %v655_v55 = vld [vmem:[%s3828_s2] sm:$0x3]  ;;  %vm1964_vm9 = vcmask 1043456   ;;  %vm1959_vm10 = vcmask 56320  }
  0x7d   : > { %768 = vmatprep.subr.bf16.mxu0 %v2963_v20  ;;  %v664_v57 = vrot.slane %v655_v55, %v3633_v53  ;;  %v660_v58 = vrot.slane %v655_v55, %v3635_v54  ;;  %v2995_v7 = vld [vmem:[#allocation6 + $0x38] sm:$0xff]   ;;  %v2996_v9 = vld [vmem:[#allocation6 + $0x70] sm:$0xff]   ;;  %v2999_v12 = vld [vmem:[#allocation6 + $0x28] sm:$0xff]   ;;  %s2754_s25 = sshll.u32 %s3854_s21, 3 }
  0x7e   : > { %2760 = vmatpush3.bf16.msra.mxu1 %v2983_v30  ;;  %v2997_v10 = vld [vmem:[#allocation6 + $0x30] sm:$0xff]   ;;  %v3000_v13 = vld [vmem:[#allocation6 + $0x60] sm:$0xff]   ;;  %v3002_v15 = vld [vmem:[#allocation6 + $0x58] sm:$0xff]  }
  0x7f   : > { %2761 = vmatprep.subr.bf16.mxu1 %v2984_v31  ;;  %v3001_v14 = vld [vmem:[#allocation6 + $0x20] sm:$0xff]   ;;  %v3003_v16 = vld [vmem:[#allocation6 + $0x18] sm:$0xff]   ;;  %v3004_v17 = vld [vmem:[#allocation6 + $0x50] sm:$0xff]  }
  0x80   : > { %628 = vrot.lane.b32.xlu0 %v627_v18, %s3409_s29  ;;  %769 = vmatpush1.bf16.msra.mxu0 %v2965_v22  ;;  %v3005_v18 = vld [vmem:[#allocation6 + $0x10] sm:$0xff]   ;;  %v3006_v19 = vld [vmem:[#allocation6 + $0x48] sm:$0xff]   ;;  %v3008_v21 = vld [vmem:[#allocation6 + $0x40] sm:$0xff]   ;;  %s596_s29 = scalar_lea.vmem %s3841_s15, %s2754_s25 }
  0x81   : > { %770 = vmatprep.subr.bf16.mxu0 %v2966_v24  ;;  %v3007_v20 = vld [vmem:[#allocation6 + $0x8] sm:$0xff]   ;;  %v3009_v22 = vld [vmem:[#allocation6] sm:$0xff]   ;;  %v3016_v26 = vld [vmem:[%s3832_s6 + $0x64] ss:$8 sps:$4 sm:$0xff]  }
  0x82   : > { %2762 = vmatpush3.bf16.msra.mxu1 %v2985_v33  ;;  %v3011_v24 = vld [vmem:[%s3832_s6 + $0x70] ss:$8 sps:$4 sm:$0xff]   ;;  %v3013_v25 = vld [vmem:[%s3832_s6 + $0x74] ss:$8 sps:$4 sm:$0xff]   ;;  %v3014_v27 = vld [vmem:[%s3832_s6 + $0x60] ss:$8 sps:$4 sm:$0xff]  }
  0x83   : > { %2763 = vmatprep.subr.bf16.mxu1 %v2986_v35  ;;  %v3022_v30 = vld [vmem:[%s3832_s6 + $0x44] ss:$8 sps:$4 sm:$0xff]   ;;  %v3020_v31 = vld [vmem:[%s3832_s6 + $0x40] ss:$8 sps:$4 sm:$0xff]   ;;  %v3023_v33 = vld [vmem:[%s3832_s6 + $0x30] ss:$8 sps:$4 sm:$0xff]  }
  0x84   : > { %771 = vmatpush1.bf16.msra.mxu0 %v2968_v28  ;;  %v3019_v28 = vld [vmem:[%s3832_s6 + $0x54] ss:$8 sps:$4 sm:$0xff]   ;;  %v3026_v35 = vld [vmem:[%s3832_s6 + $0x20] ss:$8 sps:$4 sm:$0xff]  }
  0x85   : > { %772 = vmatprep.subr.bf16.mxu0 %v2969_v29  ;;  %v3017_v29 = vld [vmem:[%s3832_s6 + $0x50] ss:$8 sps:$4 sm:$0xff]  }
  0x86   : > { %2764 = vmatpush3.bf16.msra.mxu1 %v2987_v37  ;;  %v3029_v37 = vld [vmem:[%s3832_s6 + $0x10] ss:$8 sps:$4 sm:$0xff]  }
  0x87   : > { %2765 = vmatprep.subr.bf16.mxu1 %v2988_v44  ;;  %v3055_v44 = vld [vmem:[%s3832_s6 + $0xd4] ss:$8 sps:$4 sm:$0xff]  }
  0x88   : > { %773 = vmatpush1.bf16.msra.mxu0 %v2971_v32  ;;  %v3025_v32 = vld [vmem:[%s3832_s6 + $0x34] ss:$8 sps:$4 sm:$0xff]  }
  0x89   : > { %774 = vmatprep.subr.bf16.mxu0 %v2972_v34  ;;  %v3028_v34 = vld [vmem:[%s3832_s6 + $0x24] ss:$8 sps:$4 sm:$0xff]  }
  0x8a   : > { %2766 = vmatpush3.bf16.msra.mxu1 %v2989_v45  ;;  %v3053_v45 = vld [vmem:[%s3832_s6 + $0xd0] ss:$8 sps:$4 sm:$0xff]  }
  0x8b   : > { %2767 = vmatprep.subr.bf16.mxu1 %v2990_v46  ;;  %v3061_v46 = vld [vmem:[%s3832_s6 + $0xc4] ss:$8 sps:$4 sm:$0xff]  }
  0x8c   : > { %775 = vmatpush1.bf16.msra.mxu0 %v2974_v36  ;;  %v3031_v36 = vld [vmem:[%s3832_s6 + $0x14] ss:$8 sps:$4 sm:$0xff]  }
  0x8d   : > { %790 = vmatprep.subr.bf16.mxu0 %v2975_v38  ;;  %v3037_v38 = vld [vmem:[%s3832_s6 + $0x4] ss:$8 sps:$4 sm:$0xff]  }
  0x8e   : > { %2768 = vmatpush3.bf16.msra.mxu1 %v2991_v47  ;;  %v3059_v47 = vld [vmem:[%s3832_s6 + $0xc0] ss:$8 sps:$4 sm:$0xff]  }
  0x8f   : > { %2769 = vmatprep.subr.bf16.mxu1 %v2992_v48  ;;  %v3067_v48 = vld [vmem:[%s3832_s6 + $0xb4] ss:$8 sps:$4 sm:$0xff]  }
  0x90   : > { %791 = vmatpush2.bf16.msra.mxu0 %v2977_v39  ;;  %v3035_v39 = vld [vmem:[%s3832_s6] ss:$8 sps:$4 sm:$0xff]  }
  0x91   : > { %1530 = vmatprep.subr.bf16.mxu0 %v3013_v25  ;;  %v3062_v25 = vld [vmem:[%s3832_s6 + $0x120] ss:$8 sps:$4 sm:$0xff]  }
  0x92   : > { %2770 = vmatpush3.bf16.msra.mxu1 %v2993_v49  ;;  %v3065_v49 = vld [vmem:[%s3832_s6 + $0xb0] ss:$8 sps:$4 sm:$0xff]  }
  0x93   : > { %2777 = vmatprep.subr.bf16.mxu1 %v2994_v50 }
  0xee   : > { %v623_v40 = vpop.permute.xlu0 %622 }
  0xef   : > { %v632_v41 = vsel %vm630_vm2, %v3626_v0, %v623_v40  ;;  %v3043_v40 = vld [vmem:[%s3832_s6 + $0xf4] ss:$8 sps:$4 sm:$0xff]  }
  0xf2   : > { %v629_v42 = vpop.permute.xlu0 %628 }
  0xf3   : > { %2588 = vmatprep.mubr.msk.bf16.mxu0 %vm757_vm3, %v629_v42  ;;  %v635_v43 = vsel %vm633_vm4, %v632_v41, %v629_v42  ;;  %v3041_v41 = vld [vmem:[%s3832_s6 + $0xf0] ss:$8 sps:$4 sm:$0xff]   ;;  %v3049_v42 = vld [vmem:[%s3832_s6 + $0xe4] ss:$8 sps:$4 sm:$0xff]  }
  0xf4   : > { %793 = vmatmul.mubr.bf16.vlgmr.msra.gmra.mxu0 %v635_v43  ;;  %v3047_v43 = vld [vmem:[%s3832_s6 + $0xe0] ss:$8 sps:$4 sm:$0xff]  }
  0xf5   : > { %1531 = vmatpush1.bf16.msra.mxu0 %v3011_v24  ;;  %v3064_v24 = vld [vmem:[%s3832_s6 + $0x124] ss:$8 sps:$4 sm:$0xff]  }
  0xf6   : > { %1532 = vmatprep.subr.bf16.mxu0 %v3016_v26  ;;  %v3070_v26 = vld [vmem:[%s3832_s6 + $0x114] ss:$8 sps:$4 sm:$0xff]  }
  0xf9   : > { %1533 = vmatpush1.bf16.msra.mxu0 %v3014_v27  ;;  %v3068_v27 = vld [vmem:[%s3832_s6 + $0x110] ss:$8 sps:$4 sm:$0xff]  }
  0xfa   : > { %1534 = vmatprep.subr.bf16.mxu0 %v3019_v28  ;;  %v3073_v28 = vld [vmem:[%s3832_s6 + $0xa4] ss:$8 sps:$4 sm:$0xff]  }
  0xfd   : > { %1535 = vmatpush1.bf16.msra.mxu0 %v3017_v29  ;;  %v3071_v29 = vld [vmem:[%s3832_s6 + $0xa0] ss:$8 sps:$4 sm:$0xff]  }
  0xfe   : > { %1536 = vmatprep.subr.bf16.mxu0 %v3022_v30  ;;  %v3076_v30 = vld [vmem:[%s3832_s6 + $0x104] ss:$8 sps:$4 sm:$0xff]  }
 0x101   : > { %1537 = vmatpush1.bf16.msra.mxu0 %v3020_v31  ;;  %v3074_v31 = vld [vmem:[%s3832_s6 + $0x100] ss:$8 sps:$4 sm:$0xff]  }
 0x102   : > { %1538 = vmatprep.subr.bf16.mxu0 %v3025_v32  ;;  %v3079_v32 = vld [vmem:[%s3832_s6 + $0x94] ss:$8 sps:$4 sm:$0xff]  }
 0x105   : > { %1539 = vmatpush1.bf16.msra.mxu0 %v3023_v33  ;;  %v3077_v33 = vld [vmem:[%s3832_s6 + $0x90] ss:$8 sps:$4 sm:$0xff]  }
 0x106   : > { %1540 = vmatprep.subr.bf16.mxu0 %v3028_v34  ;;  %v3413_v34 = vmov 0  }
 0x109   : > { %1541 = vmatpush1.bf16.msra.mxu0 %v3026_v35  ;;  %v3082_v35 = vld [vmem:[%s3832_s6 + $0x84] ss:$8 sps:$4 sm:$0xff]  }
 0x10a   : > { %1542 = vmatprep.subr.bf16.mxu0 %v3031_v36  ;;  %v3080_v36 = vld [vmem:[%s3832_s6 + $0x80] ss:$8 sps:$4 sm:$0xff]  }
 0x10d   : > { %1543 = vmatpush1.bf16.msra.mxu0 %v3029_v37  ;;  %v3083_v37 = vld [vmem:[#allocation7 + $0x78] sm:$0xff]  }
 0x10e   : > { %1544 = vmatprep.subr.bf16.mxu0 %v3037_v38  ;;  %v3084_v38 = vld [vmem:[#allocation9 + $0x78] sm:$0xff]  }
 0x111   : > { %1545 = vmatpush1.bf16.msra.mxu0 %v3035_v39 }
 0x112   : > { %1546 = vmatprep.subr.bf16.mxu0 %v3043_v40 }
 0x115   : > { %1547 = vmatpush2.bf16.msra.mxu0 %v3041_v41 }
 0x116   : > { %1548 = vmatprep.subr.bf16.mxu0 %v3049_v42 }
 0x119   : > { %1549 = vmatpush2.bf16.msra.mxu0 %v3047_v43 }
 0x11a   : > { %1550 = vmatprep.subr.bf16.mxu0 %v3055_v44  ;;  %v3085_v44 = vld [vmem:[#allocation7 + $0x38] sm:$0xff]  }
 0x11d   : > { %1551 = vmatpush2.bf16.msra.mxu0 %v3053_v45 }
 0x11e   : > { %1552 = vmatprep.subr.bf16.mxu0 %v3061_v46 }
 0x121   : > { %1553 = vmatpush2.bf16.msra.mxu0 %v3059_v47  ;;  %v3087_v47 = vld [vmem:[#allocation7 + $0x70] sm:$0xff]  }
 0x122   : > { %1554 = vmatprep.subr.bf16.mxu0 %v3067_v48 }
 0x125   : > { %1555 = vmatpush2.bf16.msra.mxu0 %v3065_v49 }
 0x126   : > { %1556 = vmatprep.subr.bf16.mxu0 %v3073_v28 }
 0x129   : > { %1557 = vmatpush2.bf16.msra.mxu0 %v3071_v29 }
 0x12a   : > { %1558 = vmatprep.subr.bf16.mxu0 %v3079_v32 }
 0x12d   : > { %1559 = vmatpush2.bf16.msra.mxu0 %v3077_v33 }
 0x12e   : > { %1560 = vmatprep.subr.bf16.mxu0 %v3082_v35 }
 0x131   : > { %1561 = vmatpush2.bf16.msra.mxu0 %v3080_v36 }
 0x132   : > { %2823 = vmatprep.subr.bf16.mxu0 %v3084_v38 }
 0x1b4   : > { %v794_v56 = vpop.f32.mrf.mxu0 }
 0x1b5   : > { %v795_v63 = vadd.f32 %v794_v56, %v660_v58 }
 0x1b6   : > { %v796_v59 = vpop.f32.mrf.mxu0 }
 0x1b7   : > { %v797_v61 = vadd.f32 %v796_v59, %v664_v57  ;;  %v803_v5 = vmax.f32 %v795_v63, 0.0 }
 0x1b8   : > { %v798_v60 = vpop.f32.mrf.mxu0 }
 0x1b9   : > { %v799_v62 = vadd.f32 %v798_v60, %v660_v58  ;;  %v804_v3 = vmax.f32 %v797_v61, 0.0 }
 0x1ba   : > { %v800_v0 = vpop.f32.mrf.mxu0 }
 0x1bb   : > { %v801_v1 = vadd.f32 %v800_v0, %v664_v57  ;;  %v805_v2 = vmax.f32 %v799_v62, 0.0 }
 0x1bd   : > { %v806_v4 = vmax.f32 %v801_v1, 0.0  ;;  %v807_v8 = vpack.c.bf16 %v805_v2, %v803_v5 }
 0x1bf   : > { %v808_v6 = vpack.c.bf16 %v806_v4, %v804_v3  ;;  %v3412_v4 = vmov 65535  }
 0x1c0   : > { %v1172_v5 = vsel %vm624_vm1, 4294967295, %v3412_v4 }
 0x1c1   : > { %969 = vmatprep.mubr.bf16.mxu1 %v808_v6 }
 0x1c2   : > { %970 = vmatmul.mubr.bf16.vlgmr.msra.gmra.mxu1 %v807_v8 }
 0x1c3   : > { %2778 = vmatpush3.bf16.msra.mxu1 %v2995_v7  ;;  %1138 = vmatprep.mubr.bf16.mxu1 %v808_v6 }
 0x1c4   : > { %2779 = vmatprep.subr.bf16.mxu1 %v2996_v9  ;;  %v1173_v9 = vsel %vm1171_vm6, %v1172_v5, 0  ;;  %v3102_v5 = vld [vmem:[#allocation9 + $0x18] sm:$0xff]  }
 0x1c7   : > { %2780 = vmatpush3.bf16.msra.mxu1 %v2997_v10 }
 0x1c8   : > { %2781 = vmatprep.subr.bf16.mxu1 %v2998_v11  ;;  %v3034_v11 = vld [vmem:[%s3832_s6 + $0x174] ss:$8 sps:$4 sm:$0xff]  }
 0x1cb   : > { %2782 = vmatpush3.bf16.msra.mxu1 %v2999_v12 }
 0x1cc   : > { %2783 = vmatprep.subr.bf16.mxu1 %v3000_v13  ;;  %v3010_v13 = vld [vmem:[%s3831_s5] sm:$0x1f]  }
 0x1cf   : > { %2784 = vmatpush3.bf16.msra.mxu1 %v3001_v14  ;;  %v3032_v14 = vld [vmem:[%s3832_s6 + $0x170] ss:$8 sps:$4 sm:$0xff]  }
 0x1d0   : > { %2785 = vmatprep.subr.bf16.mxu1 %v3002_v15  ;;  %v3040_v15 = vld [vmem:[%s3832_s6 + $0x164] ss:$8 sps:$4 sm:$0xff]  }
 0x1d3   : > { %2786 = vmatpush3.bf16.msra.mxu1 %v3003_v16  ;;  %v3038_v16 = vld [vmem:[%s3832_s6 + $0x160] ss:$8 sps:$4 sm:$0xff]  }
 0x1d4   : > { %2787 = vmatprep.subr.bf16.mxu1 %v3004_v17  ;;  %v3046_v17 = vld [vmem:[%s3832_s6 + $0x154] ss:$8 sps:$4 sm:$0xff]  }
 0x1d7   : > { %2788 = vmatpush3.bf16.msra.mxu1 %v3005_v18  ;;  %v3044_v18 = vld [vmem:[%s3832_s6 + $0x150] ss:$8 sps:$4 sm:$0xff]  }
 0x1d8   : > { %2789 = vmatprep.subr.bf16.mxu1 %v3006_v19  ;;  %v3052_v19 = vld [vmem:[%s3832_s6 + $0x144] ss:$8 sps:$4 sm:$0xff]  }
 0x1db   : > { %2790 = vmatpush3.bf16.msra.mxu1 %v3007_v20  ;;  %v3050_v20 = vld [vmem:[%s3832_s6 + $0x140] ss:$8 sps:$4 sm:$0xff]  }
 0x1dc   : > { %2791 = vmatprep.subr.bf16.mxu1 %v3008_v21  ;;  %v3058_v21 = vld [vmem:[%s3832_s6 + $0x134] ss:$8 sps:$4 sm:$0xff]  }
 0x1df   : > { %2792 = vmatpush3.bf16.msra.mxu1 %v3009_v22  ;;  %v3056_v22 = vld [vmem:[%s3832_s6 + $0x130] ss:$8 sps:$4 sm:$0xff]  }
 0x1e0   : > { %2847 = vmatprep.subr.bf16.mxu1 %v3410_v23 }
 0x1e2   : > { %1139 = vmatmul.mubr.bf16.vlgmr.msra.gmra.mxu1 %v807_v8 }
 0x1e3   : > { %2849 = vmatprep.mubr.msk.bf16.mxu1 %vm3411_vm5, %v3410_v23 }
 0x282   : > { %v2771_v50 = vpop.f32.mrf.mxu1 }
 0x284   : > { %v2772_v51 = vpop.f32.mrf.mxu1 }
 0x285   : > { %v2773_v60 = vadd.f32 %v2772_v51, %v2771_v50  ;;  %v3089_v50 = vld [vmem:[#allocation7 + $0x30] sm:$0xff]  }
 0x286   : > { %v2774_v52 = vpop.f32.mrf.mxu1 }
 0x288   : > { %v2775_v55 = vpop.f32.mrf.mxu1 }
 0x289   : > { %v2776_v62 = vadd.f32 %v2775_v55, %v2774_v52  ;;  %v3086_v52 = vld [vmem:[#allocation9 + $0x38] sm:$0xff]   ;;  %v3091_v55 = vld [vmem:[#allocation7 + $0x68] sm:$0xff]  }
 0x2a2   : > { %v2793_v56 = vpop.f32.mrf.mxu1 }
 0x2a4   : > { %v2794_v57 = vpop.f32.mrf.mxu1 }
 0x2a5   : > { %v2795_v58 = vadd.f32 %v2794_v57, %v2793_v56  ;;  %v3088_v56 = vld [vmem:[#allocation9 + $0x70] sm:$0xff]   ;;  %v3093_v57 = vld [vmem:[#allocation7 + $0x28] sm:$0xff]  }
 0x2a6   : > { %v2796_v59 = vpop.f32.mrf.mxu1 }
 0x2a7   : > { %v1147_v63 = vmax.f32 %v2773_v60, %v2795_v58  ;;  %v3090_v58 = vld [vmem:[#allocation9 + $0x30] sm:$0xff]   ;;  %v3092_v60 = vld [vmem:[#allocation9 + $0x68] sm:$0xff]  }
 0x2a8   : > { %v2797_v61 = vpop.f32.mrf.mxu1 }
 0x2a9   : > { %v2798_v0 = vadd.f32 %v2797_v61, %v2796_v59  ;;  %v1152_v2 = vrot.slane %v1147_v63, 1  ;;  %v3095_v59 = vld [vmem:[#allocation7 + $0x60] sm:$0xff]  }
 0x2aa   : > { %v3097_v61 = vld [vmem:[#allocation7 + $0x20] sm:$0xff]  }
 0x2ab   : > { %v1148_v1 = vmax.f32 %v2776_v62, %v2798_v0  ;;  %v3094_v62 = vld [vmem:[#allocation9 + $0x28] sm:$0xff]   ;;  %v3098_v0 = vld [vmem:[#allocation9 + $0x20] sm:$0xff]  }
 0x2ad   : > { %v1153_v3 = vrot.slane %v1148_v1, 1 }
 0x2af   : > { %v1154_v6 = vsel %vm624_vm1, %v1152_v2, %v1153_v3  ;;  %v1158_v7 = vmax.f32 %v1148_v1, %v1153_v3  ;;  %v3099_v1 = vld [vmem:[#allocation7 + $0x58] sm:$0xff]  }
 0x2b0   : > { %v1157_v8 = vmax.f32 %v1147_v63, %v1154_v6  ;;  %v3096_v63 = vld [vmem:[#allocation9 + $0x60] sm:$0xff]   ;;  %v3100_v2 = vld [vmem:[#allocation9 + $0x58] sm:$0xff]   ;;  %v3103_v6 = vld [vmem:[#allocation7 + $0x50] sm:$0xff]  }
 0x2b1   : > { %v3101_v3 = vld [vmem:[#allocation7 + $0x18] sm:$0xff]  }
 0x2b2   : > { %v1159_v10 = vpack.c.bf16 %v1158_v7, %v1157_v8  ;;  %v3104_v7 = vld [vmem:[#allocation9 + $0x50] sm:$0xff]  }
 0x2b3   : > { %v3105_v8 = vld [vmem:[#allocation7 + $0x10] sm:$0xff]  }
 0x2b4   : > { %v1175_v12 = vand.u32 %v1173_v9, %v1159_v10  ;;  %v3106_v9 = vld [vmem:[#allocation9 + $0x10] sm:$0xff]   ;;  %v3107_v10 = vld [vmem:[#allocation7 + $0x48] sm:$0xff]  }
 0x2b6   : > { %2848 = vmatpush3.bf16.msra.mxu1 %v1175_v12  ;;  %v3109_v12 = vld [vmem:[#allocation7 + $0x8] sm:$0xff]  }
 0x2b7   : > { %1571 = vmatprep.subr.bf16.mxu1 %v3034_v11  ;;  %v3108_v11 = vld [vmem:[#allocation9 + $0x48] sm:$0xff]  }
 0x2b9   : > { %2850 = vmatmul.mubr.msk.bf16.vlgmr.msra.gmra.mxu1 %vm1167_vm7, %v3010_v13  ;;  %v3110_v13 = vld [vmem:[#allocation9 + $0x8] sm:$0xff]  }
 0x2ba   : > { %1572 = vmatpush1.bf16.msra.mxu1 %v3032_v14  ;;  %1603 = vmatprep.mubr.bf16.mxu1 %v3413_v34  ;;  %v3111_v14 = vld [vmem:[#allocation7 + $0x40] sm:$0xff]  }
 0x2bb   : > { %1573 = vmatprep.subr.bf16.mxu1 %v3040_v15  ;;  %v3112_v15 = vld [vmem:[#allocation9 + $0x40] sm:$0xff]  }
 0x2be   : > { %1574 = vmatpush1.bf16.msra.mxu1 %v3038_v16  ;;  %v3113_v16 = vld [vmem:[#allocation7] sm:$0xff]  }
 0x2bf   : > { %1575 = vmatprep.subr.bf16.mxu1 %v3046_v17  ;;  %v3114_v17 = vld [vmem:[#allocation9] sm:$0xff]  }
 0x2c2   : > { %1576 = vmatpush1.bf16.msra.mxu1 %v3044_v18  ;;  %v1278_v18 = vld [vmem:[%s3833_s7] sm:$0x3] }
 0x2c3   : > { %1577 = vmatprep.subr.bf16.mxu1 %v3052_v19 }
 0x2c6   : > { %1578 = vmatpush1.bf16.msra.mxu1 %v3050_v20 }
 0x2c7   : > { %1579 = vmatprep.subr.bf16.mxu1 %v3058_v21  ;;  %v1283_v21 = vrot.slane %v1278_v18, %v3635_v54 }
 0x2ca   : > { %1580 = vmatpush1.bf16.msra.mxu1 %v3056_v22 }
 0x2cb   : > { %1581 = vmatprep.subr.bf16.mxu1 %v3064_v24  ;;  %v1287_v24 = vrot.slane %v1278_v18, %v3633_v53  ;;  %v3151_v18 = vld [vmem:[#allocation12 + $0x30] ss:$8 sps:$4 sm:$0xff]  }
 0x2ce   : > { %1582 = vmatpush1.bf16.msra.mxu1 %v3062_v25 }
 0x2cf   : > { %1583 = vmatprep.subr.bf16.mxu1 %v3070_v26 }
 0x2d2   : > { %1584 = vmatpush1.bf16.msra.mxu1 %v3068_v27 }
 0x2d3   : > { %1585 = vmatprep.subr.bf16.mxu1 %v3076_v30 }
 0x2d6   : > { %1586 = vmatpush1.bf16.msra.mxu1 %v3074_v31 }
 0x2d7   : > { %2801 = vmatprep.subr.bf16.mxu1 %v3083_v37 }
 0x379   : > { %v1211_v39 = vpop.f32.mrf.mxu1 }
 0x37b   : > { %v2851_v40 = vpop.f32.mrf.mxu1 }
 0x37d   : > { %v1214_v41 = vpop.f32.mrf.mxu1 }
 0x37e   : > { %v1218_v42 = vpack.c.bf16 %v1214_v41, %v1211_v39 }
 0x37f   : > { %v2852_v43 = vpop.f32.mrf.mxu1 }
 0x380   : > { %v1228_v45 = vrot.slane %v1218_v42, 1  ;;  %v1222_v46 = vshll.u32 %v1218_v42, 16  ;;  %v1220_v48 = vshrl.u32 %v1218_v42, 16 }
 0x382   : > { %1604 = vmatmul.mubr.bf16.vlgmr.msra.gmra.mxu1 %v1228_v45  ;;  %v1224_v49 = vrot.slane %v1222_v46, 1 }
 0x383   : > { %2802 = vmatpush3.bf16.msra.mxu1 %v3085_v44 }
 0x384   : > { %v1225_v51 = vor.u32 %v1224_v49, %v1220_v48  ;;  %2803 = vmatprep.subr.bf16.mxu1 %v3087_v47 }
 0x386   : > { %1562 = vmatprep.mubr.bf16.mxu0 %v1225_v51 }
 0x387   : > { %1563 = vmatmul.mubr.bf16.vlgmr.msra.gmra.mxu0 %v1218_v42  ;;  %2804 = vmatpush3.bf16.msra.mxu1 %v3089_v50  ;;  %v1965_v50 = vsel %vm1963_vm8, 4294967295, %v3412_v4  ;;  %v3123_v4 = vld [vmem:[#allocation10 + $0x54] ss:$8 sps:$4 sm:$0xff]  }
 0x388   : > { %2824 = vmatpush3.bf16.msra.mxu0 %v3086_v52  ;;  %2805 = vmatprep.subr.bf16.mxu1 %v3091_v55  ;;  %v1966_v55 = vsel %vm1964_vm9, %v1965_v50, 0 }
 0x389   : > { %2825 = vmatprep.subr.bf16.mxu0 %v3088_v56 }
 0x38b   : > { %2806 = vmatpush3.bf16.msra.mxu1 %v3093_v57 }
 0x38c   : > { %2826 = vmatpush3.bf16.msra.mxu0 %v3090_v58  ;;  %2807 = vmatprep.subr.bf16.mxu1 %v3095_v59  ;;  %v1958_v58 = vld [vmem:[%s3836_s10] sm:$0x3] }
 0x38d   : > { %2827 = vmatprep.subr.bf16.mxu0 %v3092_v60  ;;  %v3115_v59 = vld [vmem:[#allocation10 + $0x70] ss:$8 sps:$4 sm:$0xff]   ;;  %v3120_v60 = vld [vmem:[#allocation10 + $0x64] ss:$8 sps:$4 sm:$0xff]  }
 0x38f   : > { %2808 = vmatpush3.bf16.msra.mxu1 %v3097_v61  ;;  %v3118_v61 = vld [vmem:[#allocation10 + $0x60] ss:$8 sps:$4 sm:$0xff]  }
 0x390   : > { %2828 = vmatpush3.bf16.msra.mxu0 %v3094_v62  ;;  %2809 = vmatprep.subr.bf16.mxu1 %v3099_v1  ;;  %v3121_v62 = vld [vmem:[#allocation10 + $0x50] ss:$8 sps:$4 sm:$0xff]   ;;  %v3129_v1 = vld [vmem:[#allocation10 + $0x34] ss:$8 sps:$4 sm:$0xff]  }
 0x391   : > { %2829 = vmatprep.subr.bf16.mxu0 %v3096_v63  ;;  %v3126_v63 = vld [vmem:[#allocation10 + $0x44] ss:$8 sps:$4 sm:$0xff]  }
 0x393   : > { %2810 = vmatpush3.bf16.msra.mxu1 %v3101_v3  ;;  %v3132_v3 = vld [vmem:[#allocation10 + $0x24] ss:$8 sps:$4 sm:$0xff]  }
 0x394   : > { %2830 = vmatpush3.bf16.msra.mxu0 %v3098_v0  ;;  %2811 = vmatprep.subr.bf16.mxu1 %v3103_v6  ;;  %v3124_v0 = vld [vmem:[#allocation10 + $0x40] ss:$8 sps:$4 sm:$0xff]   ;;  %v3135_v6 = vld [vmem:[#allocation10 + $0x14] ss:$8 sps:$4 sm:$0xff]  }
 0x395   : > { %2831 = vmatprep.subr.bf16.mxu0 %v3100_v2  ;;  %v3127_v2 = vld [vmem:[#allocation10 + $0x30] ss:$8 sps:$4 sm:$0xff]  }
 0x397   : > { %2812 = vmatpush3.bf16.msra.mxu1 %v3105_v8  ;;  %v3136_v8 = vld [vmem:[#allocation10] ss:$8 sps:$4 sm:$0xff]  }
 0x398   : > { %2832 = vmatpush3.bf16.msra.mxu0 %v3102_v5  ;;  %2813 = vmatprep.subr.bf16.mxu1 %v3107_v10  ;;  %v3130_v5 = vld [vmem:[#allocation10 + $0x20] ss:$8 sps:$4 sm:$0xff]   ;;  %v3141_v10 = vld [vmem:[#allocation12 + $0x74] ss:$8 sps:$4 sm:$0xff]  }
 0x399   : > { %2833 = vmatprep.subr.bf16.mxu0 %v3104_v7  ;;  %v3138_v7 = vld [vmem:[#allocation10 + $0x4] ss:$8 sps:$4 sm:$0xff]  }
 0x39b   : > { %2814 = vmatpush3.bf16.msra.mxu1 %v3109_v12  ;;  %v3142_v12 = vld [vmem:[#allocation12 + $0x60] ss:$8 sps:$4 sm:$0xff]  }
 0x39c   : > { %2834 = vmatpush3.bf16.msra.mxu0 %v3106_v9  ;;  %2815 = vmatprep.subr.bf16.mxu1 %v3111_v14  ;;  %v3139_v9 = vld [vmem:[#allocation12 + $0x70] ss:$8 sps:$4 sm:$0xff]  }
 0x39d   : > { %2835 = vmatprep.subr.bf16.mxu0 %v3108_v11  ;;  %v3144_v11 = vld [vmem:[#allocation12 + $0x64] ss:$8 sps:$4 sm:$0xff]   ;;  %v3145_v14 = vld [vmem:[#allocation12 + $0x50] ss:$8 sps:$4 sm:$0xff]  }
 0x39f   : > { %2816 = vmatpush3.bf16.msra.mxu1 %v3113_v16  ;;  %v3148_v16 = vld [vmem:[#allocation12 + $0x40] ss:$8 sps:$4 sm:$0xff]  }
 0x3a0   : > { %2836 = vmatpush3.bf16.msra.mxu0 %v3110_v13  ;;  %2853 = vmatprep.subr.bf16.mxu1 %v3410_v23  ;;  %v3147_v13 = vld [vmem:[#allocation12 + $0x54] ss:$8 sps:$4 sm:$0xff]  }
 0x3a1   : > { %2837 = vmatprep.subr.bf16.mxu0 %v3112_v15  ;;  %v3150_v15 = vld [vmem:[#allocation12 + $0x44] ss:$8 sps:$4 sm:$0xff]  }
 0x3a4   : > { %2838 = vmatpush3.bf16.msra.mxu0 %v3114_v17  ;;  %v3153_v17 = vld [vmem:[#allocation12 + $0x34] ss:$8 sps:$4 sm:$0xff]  }
 0x3a5   : > { %2368 = vmatprep.subr.bf16.mxu0 %v3141_v10 }
 0x442   : > { %v1605_v19 = vpop.f32.mrf.mxu1 }
 0x444   : > { %v1607_v20 = vpop.f32.mrf.mxu1 }
 0x446   : > { %v1609_v22 = vpop.f32.mrf.mxu1 }
 0x447   : > { %v1564_v25 = vpop.f32.mrf.mxu0  ;;  %v3157_v22 = vld [vmem:[#allocation12 + $0x10] ss:$8 sps:$4 sm:$0xff]  }
 0x448   : > { %v1565_v26 = vadd.f32 %v1564_v25, %v1283_v21  ;;  %v1610_v27 = vpop.f32.mrf.mxu1  ;;  %v3159_v21 = vld [vmem:[#allocation12 + $0x14] ss:$8 sps:$4 sm:$0xff]   ;;  %v3160_v25 = vld [vmem:[#allocation12] ss:$8 sps:$4 sm:$0xff]  }
 0x449   : > { %v1566_v28 = vpop.f32.mrf.mxu0  ;;  %v3163_v27 = vld [vmem:[#allocation12 + $0xf0] ss:$8 sps:$4 sm:$0xff]  }
 0x44a   : > { %v1606_v29 = vadd.f32 %v1605_v19, %v1565_v26  ;;  %v1567_v30 = vadd.f32 %v1566_v28, %v1287_v24  ;;  %v3156_v19 = vld [vmem:[#allocation12 + $0x24] ss:$8 sps:$4 sm:$0xff]   ;;  %v3165_v26 = vld [vmem:[#allocation12 + $0xf4] ss:$8 sps:$4 sm:$0xff]  }
 0x44b   : > { %v1568_v31 = vpop.f32.mrf.mxu0  ;;  %v3162_v24 = vld [vmem:[#allocation12 + $0x4] ss:$8 sps:$4 sm:$0xff]  }
 0x44c   : > { %v1608_v32 = vadd.f32 %v1607_v20, %v1567_v30  ;;  %v1612_v33 = vmax.f32 %v1606_v29, 0.0  ;;  %v3154_v20 = vld [vmem:[#allocation12 + $0x20] ss:$8 sps:$4 sm:$0xff]   ;;  %v3168_v28 = vld [vmem:[#allocation12 + $0xe4] ss:$8 sps:$4 sm:$0xff]  }
 0x44d   : > { %v1569_v35 = vpop.f32.mrf.mxu0  ;;  %v3166_v29 = vld [vmem:[#allocation12 + $0xe0] ss:$8 sps:$4 sm:$0xff]   ;;  %v3171_v30 = vld [vmem:[#allocation12 + $0xd4] ss:$8 sps:$4 sm:$0xff]   ;;  %v3169_v31 = vld [vmem:[#allocation12 + $0xd0] ss:$8 sps:$4 sm:$0xff]  }
 0x44e   : > { %v1613_v36 = vmax.f32 %v1608_v32, 0.0  ;;  %v1614_v38 = vpack.c.bf16 %v1612_v33, %v1612_v33  ;;  %v3174_v32 = vld [vmem:[#allocation12 + $0xc4] ss:$8 sps:$4 sm:$0xff]   ;;  %v3172_v33 = vld [vmem:[#allocation12 + $0xc0] ss:$8 sps:$4 sm:$0xff]  }
 0x44f   : > { %v3177_v35 = vld [vmem:[#allocation12 + $0xb4] ss:$8 sps:$4 sm:$0xff]  }
 0x450   : > { %v1615_v37 = vpack.c.bf16 %v1613_v36, %v1613_v36  ;;  %v3175_v36 = vld [vmem:[#allocation12 + $0xb0] ss:$8 sps:$4 sm:$0xff]  }
 0x452   : > { %1776 = vmatprep.mubr.bf16.mxu1 %v1615_v37  ;;  %1944 = vmatprep.mubr.bf16.mxu0 %v1615_v37  ;;  %v3180_v37 = vld [vmem:[#allocation12 + $0xa4] ss:$8 sps:$4 sm:$0xff]  }
 0x453   : > { %1777 = vmatmul.mubr.bf16.vlgmr.msra.gmra.mxu1 %v1614_v38  ;;  %1945 = vmatmul.mubr.bf16.vlgmr.msra.gmra.mxu0 %v1614_v38  ;;  %v3178_v38 = vld [vmem:[#allocation12 + $0xa0] ss:$8 sps:$4 sm:$0xff]  }
 0x454   : > { %2855 = vmatprep.mubr.msk.bf16.mxu1 %vm3411_vm5, %v3410_v23  ;;  %v3117_v23 = vld [vmem:[#allocation10 + $0x74] ss:$8 sps:$4 sm:$0xff]   ;;  %2369 = vmatpush1.bf16.msra.mxu0 %v3139_v9 }
 0x455   : > { %2370 = vmatprep.subr.bf16.mxu0 %v3144_v11 }
 0x458   : > { %2371 = vmatpush1.bf16.msra.mxu0 %v3142_v12 }
 0x459   : > { %2372 = vmatprep.subr.bf16.mxu0 %v3147_v13 }
 0x45c   : > { %2373 = vmatpush1.bf16.msra.mxu0 %v3145_v14 }
 0x45d   : > { %2374 = vmatprep.subr.bf16.mxu0 %v3150_v15 }
 0x460   : > { %2375 = vmatpush1.bf16.msra.mxu0 %v3148_v16 }
 0x461   : > { %2376 = vmatprep.subr.bf16.mxu0 %v3153_v17 }
 0x464   : > { %2377 = vmatpush1.bf16.msra.mxu0 %v3151_v18 }
 0x465   : > { %2378 = vmatprep.subr.bf16.mxu0 %v3156_v19 }
 0x468   : > { %2379 = vmatpush1.bf16.msra.mxu0 %v3154_v20 }
 0x469   : > { %2380 = vmatprep.subr.bf16.mxu0 %v3159_v21 }
 0x46c   : > { %2381 = vmatpush1.bf16.msra.mxu0 %v3157_v22 }
 0x46d   : > { %2382 = vmatprep.subr.bf16.mxu0 %v3162_v24 }
 0x470   : > { %2383 = vmatpush1.bf16.msra.mxu0 %v3160_v25 }
 0x471   : > { %2384 = vmatprep.subr.bf16.mxu0 %v3165_v26 }
 0x474   : > { %2385 = vmatpush2.bf16.msra.mxu0 %v3163_v27 }
 0x475   : > { %2386 = vmatprep.subr.bf16.mxu0 %v3168_v28 }
 0x478   : > { %2387 = vmatpush2.bf16.msra.mxu0 %v3166_v29 }
 0x479   : > { %2388 = vmatprep.subr.bf16.mxu0 %v3171_v30 }
 0x47c   : > { %2389 = vmatpush2.bf16.msra.mxu0 %v3169_v31 }
 0x47d   : > { %2390 = vmatprep.subr.bf16.mxu0 %v3174_v32 }
 0x480   : > { %2391 = vmatpush2.bf16.msra.mxu0 %v3172_v33 }
 0x481   : > { %2392 = vmatprep.subr.bf16.mxu0 %v3177_v35 }
 0x484   : > { %2393 = vmatpush2.bf16.msra.mxu0 %v3175_v36 }
 0x485   : > { %2394 = vmatprep.subr.bf16.mxu0 %v3180_v37 }
 0x488   : > { %2395 = vmatpush2.bf16.msra.mxu0 %v3178_v38 }
 0x513   : > { %v2817_v39 = vpop.f32.mrf.mxu1  ;;  %v2839_v40 = vpop.f32.mrf.mxu0 }
 0x515   : > { %v2818_v41 = vpop.f32.mrf.mxu1  ;;  %v2840_v42 = vpop.f32.mrf.mxu0 }
 0x516   : > { %v2819_v43 = vadd.f32 %v2818_v41, %v2817_v39  ;;  %v2841_v44 = vadd.f32 %v2840_v42, %v2839_v40 }
 0x517   : > { %v2820_v45 = vpop.f32.mrf.mxu1  ;;  %v2842_v46 = vpop.f32.mrf.mxu0 }
 0x518   : > { %v1952_v47 = vmax.f32 %v2819_v43, %v2841_v44  ;;  %v3183_v44 = vld [vmem:[#allocation12 + $0x94] ss:$8 sps:$4 sm:$0xff]   ;;  %v3181_v45 = vld [vmem:[#allocation12 + $0x90] ss:$8 sps:$4 sm:$0xff]   ;;  %v3186_v46 = vld [vmem:[#allocation12 + $0x84] ss:$8 sps:$4 sm:$0xff]  }
 0x519   : > { %v2821_v48 = vpop.f32.mrf.mxu1  ;;  %v2843_v49 = vpop.f32.mrf.mxu0  ;;  %2396 = vmatprep.subr.bf16.mxu0 %v3183_v44 }
 0x51a   : > { %v1954_v51 = vrot.slane %v1952_v47, 1  ;;  %2397 = vmatpush2.bf16.msra.mxu0 %v3181_v45  ;;  %v2027_v48 = vld [vmem:[%s3838_s12] sm:$0x3] }
 0x51b   : > { %2398 = vmatprep.subr.bf16.mxu0 %v3186_v46  ;;  %v2032_v49 = vrot.slane %v2027_v48, %v3635_v54  ;;  %v2036_v50 = vrot.slane %v2027_v48, %v3633_v53 }
 0x51c   : > { %v1956_v52 = vmax.f32 %v1952_v47, %v1954_v51  ;;  %v3184_v47 = vld [vmem:[#allocation12 + $0x80] ss:$8 sps:$4 sm:$0xff]  }
 0x51e   : > { %v1957_v56 = vpack.c.bf16 %v1956_v52, %v1956_v52  ;;  %2399 = vmatpush2.bf16.msra.mxu0 %v3184_v47 }
 0x520   : > { %v1968_v57 = vand.u32 %v1966_v55, %v1957_v56 }
 0x522   : > { %2854 = vmatpush3.bf16.msra.mxu1 %v1968_v57 }
 0x523   : > { %2119 = vmatprep.subr.bf16.mxu1 %v3117_v23 }
 0x525   : > { %2856 = vmatmul.mubr.msk.bf16.vlgmr.msra.gmra.mxu1 %vm1959_vm10, %v1958_v58 }
 0x526   : > { %2120 = vmatpush1.bf16.msra.mxu1 %v3115_v59  ;;  %2151 = vmatprep.mubr.bf16.mxu1 %v3413_v34  ;;  %v3133_v34 = vld [vmem:[#allocation10 + $0x10] ss:$8 sps:$4 sm:$0xff]  }
 0x527   : > { %2121 = vmatprep.subr.bf16.mxu1 %v3120_v60 }
 0x52a   : > { %2122 = vmatpush1.bf16.msra.mxu1 %v3118_v61 }
 0x52b   : > { %2123 = vmatprep.subr.bf16.mxu1 %v3123_v4  ;;  %v2196_v4 = vld [vmem:[%s3840_s14] sm:$0x3] }
 0x52e   : > { %2124 = vmatpush1.bf16.msra.mxu1 %v3121_v62  ;;  %v2201_v62 = vrot.slane %v2196_v4, %v3635_v54 }
 0x52f   : > { %2125 = vmatprep.subr.bf16.mxu1 %v3126_v63  ;;  %v2205_v63 = vrot.slane %v2196_v4, %v3633_v53 }
 0x532   : > { %2126 = vmatpush1.bf16.msra.mxu1 %v3124_v0 }
 0x533   : > { %2127 = vmatprep.subr.bf16.mxu1 %v3129_v1 }
 0x536   : > { %2128 = vmatpush1.bf16.msra.mxu1 %v3127_v2 }
 0x537   : > { %2129 = vmatprep.subr.bf16.mxu1 %v3132_v3 }
 0x53a   : > { %2130 = vmatpush1.bf16.msra.mxu1 %v3130_v5 }
 0x53b   : > { %2131 = vmatprep.subr.bf16.mxu1 %v3135_v6 }
 0x53e   : > { %2132 = vmatpush1.bf16.msra.mxu1 %v3133_v34 }
 0x53f   : > { %2133 = vmatprep.subr.bf16.mxu1 %v3138_v7 }
 0x542   : > { %2134 = vmatpush1.bf16.msra.mxu1 %v3136_v8 }
 0x5e5   : > { %v2004_v39 = vpop.f32.mrf.mxu1 }
 0x5e6   : > { %v2010_v40 = vpack.c.bf16 %v2004_v39, %v2004_v39 }
 0x5e7   : > { %v2857_v41 = vpop.f32.mrf.mxu1 }
 0x5e8   : > { %2152 = vmatmul.mubr.bf16.vlgmr.msra.gmra.mxu1 %v2010_v40 }
 0x5e9   : > { %v2007_v42 = vpop.f32.mrf.mxu1 }
 0x5eb   : > { %v2858_v43 = vpop.f32.mrf.mxu1 }
 0x6a8   : > { %v2153_v51 = vpop.f32.mrf.mxu1 }
 0x6a9   : > { %v2154_v52 = vadd.f32 %v2153_v51, %v2032_v49 }
 0x6aa   : > { %v2155_v55 = vpop.f32.mrf.mxu1 }
 0x6ab   : > { %v2156_v56 = vadd.f32 %v2155_v55, %v2036_v50  ;;  %v2160_v23 = vmax.f32 %v2154_v52, 0.0 }
 0x6ac   : > { %v2157_v57 = vpop.f32.mrf.mxu1 }
 0x6ad   : > { %v2161_v58 = vmax.f32 %v2156_v56, 0.0  ;;  %v2162_v61 = vpack.c.bf16 %v2160_v23, %v2160_v23 }
 0x6ae   : > { %v2158_v59 = vpop.f32.mrf.mxu1 }
 0x6af   : > { %v2163_v60 = vpack.c.bf16 %v2161_v58, %v2161_v58 }
 0x6b1   : > { %2400 = vmatprep.mubr.bf16.mxu0 %v2163_v60 }
 0x6b2   : > { %2401 = vmatmul.mubr.bf16.vlgmr.msra.gmra.mxu0 %v2162_v61 }
 0x772   : > { %v2402_v0 = vpop.f32.mrf.mxu0 }
 0x773   : > { %v2403_v1 = vadd.f32 %v2402_v0, %v2201_v62 }
 0x774   : > { %v2404_v2 = vpop.f32.mrf.mxu0 }
 0x775   : > { %v2409_v3 = vmul.f32 0.5, %v2403_v1  ;;  %v2405_v5 = vadd.f32 %v2404_v2, %v2205_v63 }
 0x776   : > { %v2406_v6 = vpop.f32.mrf.mxu0 }
 0x777   : > { %3187 = vtanh.f32 %v2409_v3  ;;  %v2410_v34 = vmul.f32 0.5, %v2405_v5 }
 0x778   : > { %v2407_v7 = vpop.f32.mrf.mxu0 }
 0x779   : > { %3189 = vtanh.f32 %v2410_v34 }
 0x784   : > { %v3188_v8 = vpop.eup %3187 }
 0x785   : > { %v2413_v9 = vmul.f32 0.5, %v3188_v8 }
 0x786   : > { %v3190_v10 = vpop.eup %3189 }
 0x787   : > { %v2414_v11 = vmul.f32 0.5, %v3190_v10  ;;  %v2415_v12 = vadd.f32 0.5, %v2413_v9 }
 0x789   : > { %v2416_v13 = vadd.f32 0.5, %v2414_v11 }
 0x78b   : > { %v2419_v53 = vcombine.low %v2415_v12, %v2416_v13 }
 0x78d   : > { %2421 = vst [vmem:[%s596_s29] sm:$0xff] %v2419_v53 }
 0x78e PF: > { %s29_s18 = sadd.s32 1, %s3395_s18  }
 0x78f   : > { %p26_p2 = scmp.ge.s32.totalorder %s29_s18, 4  }
 0x791   :  { %28 = sbr.rel (!%p26_p2) target bundleno = 6 (0x6), region = 139 }
 0x796   :  { %2443 = vsyncpa [#allocation3], 1 }
 0x797   :  { %2445 = vsyncpa [#allocation3 + $0x1], 1 }
 0x798   :  { %2446 = vsyncpa [#allocation5], 1 }
 0x799   :  { %2447 = vsyncpa [#allocation8], 1 }
 0x79a   :  { %2448 = vsyncpa [#allocation11], 1 }

</bundles_post_ra>
